<compile_context>
chip_gen: v5e
topology: v5e:2x2
jax: 0.10.0
libtpu: 0.0.40
codegen_flags: <defaults>
</compile_context>

<pallas_src>
import functools
import math

import jax
import jax.numpy as jnp
from jax.experimental import pallas as pl
from jax.experimental.pallas import tpu as pltpu

# ----------------------------- small ViT config ------------------------------
IMAGE_SIZE     = 16
PATCH_SIZE     = 8
IN_CHANNELS    = 3
HIDDEN         = 128          # multiple of 128 -> lane-dense vregs & stores
NUM_HEADS      = 2
HEAD_DIM       = HIDDEN // NUM_HEADS
MLP_DIM        = 4 * HIDDEN
NUM_LAYERS     = 2
LN_EPS         = 1e-6
SELECT_LAYER   = -2           # args.mm_vision_select_layer
SELECT_FEATURE = "patch"      # args.mm_vision_select_feature
NUM_PATCHES    = (IMAGE_SIZE // PATCH_SIZE) ** 2       # 4
SEQ_LEN        = NUM_PATCHES + 1                       # 5 (patches + CLS)
SEQ_PAD        = 8                                     # sublane-aligned tokens/img
PATCH_DIM      = IN_CHANNELS * PATCH_SIZE * PATCH_SIZE # 192
PATCH_DIM_PAD  = 256                                   # lane-aligned K for patch embed

# hidden_states has NUM_LAYERS + 1 entries (embeddings + one per block).
# hidden_states[SELECT_LAYER] therefore only requires this many blocks:
_NEEDED_LAYERS = (NUM_LAYERS + 1 + SELECT_LAYER) if SELECT_LAYER < 0 else SELECT_LAYER

_LAYER_KEYS = ("ln1_w", "ln1_b", "qkv_w", "qkv_b", "proj_w", "proj_b", "ls1",
               "ln2_w", "ln2_b", "fc1_w", "fc1_b", "fc2_w", "fc2_b", "ls2")


# ----------------------------- in-kernel helpers ------------------------------
def _layernorm(x, w, b, eps):
    mu = jnp.mean(x, axis=-1, keepdims=True)
    var = jnp.mean(jnp.square(x - mu), axis=-1, keepdims=True)
    return (x - mu) * jax.lax.rsqrt(var + eps) * w + b


def _gelu_tanh(x):
    # TODO(synk): PyTorch nn.GELU defaults to the exact erf form; tanh approx used here.
    c = math.sqrt(2.0 / math.pi)
    return 0.5 * x * (1.0 + jnp.tanh(c * (x + 0.044715 * x * x * x)))


# ----------------------------- fused tower kernel -----------------------------
def _fused_tower_kernel(patches_ref, pw_ref, tok_ref, kbias_ref,
                        ln1w_ref, ln1b_ref, qkvw_ref, qkvb_ref,
                        projw_ref, projb_ref, ls1_ref,
                        ln2w_ref, ln2b_ref, fc1w_ref, fc1b_ref,
                        fc2w_ref, fc2b_ref, ls2_ref,
                        out_ref, *, num_layers, num_heads, head_dim, eps):
    """Single step: patch embed + needed blocks + patch selection for ALL T*B images.

    Token layout per image (SEQ_PAD=8 rows): rows 0..P-1 = patch tokens,
    row P = CLS token, rows P+1.. = zero padding (masked out of attention).
    Activations never leave VMEM; no scratch round-trips.
    """
    TB, P, D = out_ref.shape
    Npad = tok_ref.shape[1]
    R = TB * Npad                        # flattened token rows (tile-aligned)
    bf16 = jnp.bfloat16

    # ---- patch embedding: one lane-padded (R,256)x(256,128) bf16 MXU pass ----
    emb = jnp.dot(patches_ref[...], pw_ref[...],
                  preferred_element_type=jnp.float32)            # (R, D) f32
    # tok_ref bakes (per row): patch pos-embed + patch bias | CLS + CLS pos | 0.
    x = emb.reshape(TB, Npad, D) + tok_ref[...]                  # (TB, Npad, D) f32

    kbias = kbias_ref[...]               # (1, 1, Npad): 0 valid keys, -1e30 pad
    scale = 1.0 / math.sqrt(head_dim)

    # ---- only the blocks needed for hidden_states[SELECT_LAYER] --------------
    for l in range(num_layers):
        # attention branch (pre-LN + MHSA + LayerScale)
        h = _layernorm(x, ln1w_ref[l], ln1b_ref[l], eps)
        qkv = (jnp.dot(h.reshape(R, D).astype(bf16), qkvw_ref[l],
                       preferred_element_type=jnp.float32)
               + qkvb_ref[l]).reshape(TB, Npad, 3 * D)
        # Per-head statically-unrolled loop; 64-lane head slices are noise at
        # this toy size (restructure to (B*H, N, hd) layout at real DINOv2 dims).
        ctx_heads = []
        for hd_i in range(num_heads):
            lo = hd_i * head_dim
            qh = qkv[:, :, 0 * D + lo: 0 * D + lo + head_dim].astype(bf16)
            kh = qkv[:, :, 1 * D + lo: 1 * D + lo + head_dim].astype(bf16)
            vh = qkv[:, :, 2 * D + lo: 2 * D + lo + head_dim].astype(bf16)
            s = jnp.einsum("bqd,bkd->bqk", qh, kh,
                           preferred_element_type=jnp.float32) * scale + kbias
            s = s - jnp.max(s, axis=-1, keepdims=True)
            p = jnp.exp(s)
            p = p * pl.reciprocal(jnp.sum(p, axis=-1, keepdims=True), approx=True)
            ctx_heads.append(jnp.einsum("bqk,bkd->bqd", p.astype(bf16), vh,
                                        preferred_element_type=jnp.float32))
        ctx = jnp.concatenate(ctx_heads, axis=-1)                # (TB, Npad, D) f32
        attn = (jnp.dot(ctx.reshape(R, D).astype(bf16), projw_ref[l],
                        preferred_element_type=jnp.float32)
                + projb_ref[l]).reshape(TB, Npad, D)
        x = x + ls1_ref[l] * attn

        # MLP branch (pre-LN + GELU MLP + LayerScale)
        h = _layernorm(x, ln2w_ref[l], ln2b_ref[l], eps)
        m = (jnp.dot(h.reshape(R, D).astype(bf16), fc1w_ref[l],
                     preferred_element_type=jnp.float32) + fc1b_ref[l])
        m = _gelu_tanh(m)
        m = (jnp.dot(m.astype(bf16), fc2w_ref[l],
                     preferred_element_type=jnp.float32)
             + fc2b_ref[l]).reshape(TB, Npad, D)
        x = x + ls2_ref[l] * m

    # select_feature == 'patch': patch tokens are the aligned row prefix
    # (CLS lives at row P); single lane-dense store, no scratch round-trip.
    out_ref[...] = x[:, :P, :].astype(out_ref.dtype)


def fused_dino_tower(patch_rows, tok_init, kbias, params, num_layers):
    """patch_rows: (T*B*SEQ_PAD, PATCH_DIM_PAD) -> patch features (T*B, P, D)."""
    TB = patch_rows.shape[0] // SEQ_PAD
    D = HIDDEN
    L = max(num_layers, 1)   # keep stacked weight refs non-empty even if 0 blocks run

    def bf(a):               # bf16 matmul operands: MXU-native, half the DMA bytes
        return a.astype(jnp.bfloat16)

    pw = jnp.pad(params["patch_w"].reshape(D, -1).T,
                 ((0, PATCH_DIM_PAD - PATCH_DIM), (0, 0)))       # (256, D)
    lp = {k: params[k][:L] for k in _LAYER_KEYS}                 # only needed blocks

    kernel = functools.partial(_fused_tower_kernel, num_layers=num_layers,
                               num_heads=NUM_HEADS, head_dim=HEAD_DIM, eps=LN_EPS)

    args = (bf(patch_rows), bf(pw), tok_init, kbias,
            lp["ln1_w"], lp["ln1_b"], bf(lp["qkv_w"]), lp["qkv_b"],
            bf(lp["proj_w"]), lp["proj_b"], lp["ls1"],
            lp["ln2_w"], lp["ln2_b"], bf(lp["fc1_w"]), lp["fc1_b"],
            bf(lp["fc2_w"]), lp["fc2_b"], lp["ls2"])

    # No grid: everything fits VMEM as whole arrays; one step, no pipeline overhead.
    return pl.pallas_call(
        kernel,
        out_shape=jax.ShapeDtypeStruct((TB, NUM_PATCHES, D), jnp.float32),
        compiler_params=pltpu.CompilerParams(vmem_limit_bytes=32 * 1024 * 1024),
    )(*args)


# ----------------------------- parameter setup -------------------------------
def init_params(key):
    keys = iter(jax.random.split(key, 32))

    def nrm(shape, scale=0.02):
        return scale * jax.random.normal(next(keys), shape, dtype=jnp.float32)

    L, D, M = NUM_LAYERS, HIDDEN, MLP_DIM
    return {
        # PyTorch conv weight layout: (out_ch=D, in_ch=C, kh=p, kw=p)
        "patch_w": nrm((D, IN_CHANNELS, PATCH_SIZE, PATCH_SIZE)),
        "patch_b": nrm((D,)),
        "cls_token": nrm((1, 1, D)),
        "pos_embed": nrm((1, SEQ_LEN, D)),       # row 0 = CLS, rows 1.. = patches
        # per-layer weights stacked along a leading layer axis
        "ln1_w": jnp.ones((L, 1, D), jnp.float32),
        "ln1_b": jnp.zeros((L, 1, D), jnp.float32),
        "qkv_w": nrm((L, D, 3 * D)),
        "qkv_b": nrm((L, 1, 3 * D)),
        "proj_w": nrm((L, D, D)),
        "proj_b": nrm((L, 1, D)),
        "ls1": jnp.full((L, 1, D), 1e-5, jnp.float32),
        "ln2_w": jnp.ones((L, 1, D), jnp.float32),
        "ln2_b": jnp.zeros((L, 1, D), jnp.float32),
        "fc1_w": nrm((L, D, M)),
        "fc1_b": nrm((L, 1, M)),
        "fc2_w": nrm((L, M, D)),
        "fc2_b": nrm((L, 1, D)),
        "ls2": jnp.full((L, 1, D), 1e-5, jnp.float32),
    }


# ----------------------------- vision tower (glue) ---------------------------
def _patchify(images):
    # (T, B, C, H, W) -> (T*B*SEQ_PAD, PATCH_DIM_PAD).
    # Per image: rows 0..P-1 are flattened patches (c, ph, pw order matching the
    # conv-weight flattening so conv == patchify @ W); rows P..SEQ_PAD-1 are zero
    # (CLS + pad slots).  K dim zero-padded 192 -> 256 so the patch-embed
    # contraction is a multiple of 128 lanes.
    T, B, C, H, W = images.shape
    p = PATCH_SIZE
    gh, gw = H // p, W // p
    x = images.reshape(T * B, C, gh, p, gw, p)
    x = x.transpose(0, 2, 4, 1, 3, 5)                    # (TB, gh, gw, C, p, p)
    x = x.reshape(T * B, gh * gw, C * p * p)             # (TB, P, Cpp)
    x = jnp.pad(x, ((0, 0), (0, SEQ_PAD - NUM_PATCHES), (0, PATCH_DIM_PAD - PATCH_DIM)))
    return x.reshape(T * B * SEQ_PAD, PATCH_DIM_PAD)


@jax.jit
def dino_vision_tower_forward(images, params):
    if images.shape[0] != 2:
        raise ValueError(
            f"Expected images.shape[0] == 2, but got {images.shape}. "
            "Ensure the input includes both current and previous images.")
    if SELECT_FEATURE != "patch":
        # TODO(synk): 'cls_patch' would keep the CLS row; only 'patch' is wired here.
        raise ValueError(f"Unexpected select feature: {SELECT_FEATURE}")

    T, B = images.shape[0], images.shape[1]
    D = HIDDEN

    # cur and prev images are folded into one batch and run in a single kernel.
    patch_rows = _patchify(images)                               # (T*B*8, 256)

    # Additive token init (f32), baked in the wrapper so the kernel only adds:
    #   patch rows: patch-embed bias + patch pos-embed
    #   CLS row (at index P, after the patches, so 'patch' selection is an
    #             aligned prefix slice): cls_token + CLS pos-embed
    #   pad rows:  zero
    tok_init = jnp.zeros((1, SEQ_PAD, D), jnp.float32)
    tok_init = tok_init.at[0, :NUM_PATCHES, :].set(
        params["pos_embed"][0, 1:, :] + params["patch_b"][None, :])
    tok_init = tok_init.at[0, NUM_PATCHES, :].set(
        params["cls_token"][0, 0] + params["pos_embed"][0, 0, :])

    # Additive key-mask bias: padded token rows can never be attended to.
    kbias = jnp.where(jnp.arange(SEQ_PAD) < SEQ_LEN, 0.0, -1e30)
    kbias = kbias.astype(jnp.float32).reshape(1, 1, SEQ_PAD)

    feats = fused_dino_tower(patch_rows, tok_init, kbias, params,
                             _NEEDED_LAYERS)                     # (T*B, P, D)
    # stack([sel]) -> permute(1,0,2,3) -> stack([cur, prev])  ==  (2, B, 1, P, D)
    return feats.reshape(T, B, 1, NUM_PATCHES, D)


# ----------------------------------- main ------------------------------------
if __name__ == "__main__":
    key = jax.random.PRNGKey(0)
    kp, ki = jax.random.split(key)
    params = init_params(kp)

    # [T=2 (cur/prev), B=2, C=3, H=16, W=16], NCHW like PyTorch.
    images = jax.random.normal(
        ki, (2, 2, IN_CHANNELS, IMAGE_SIZE, IMAGE_SIZE), dtype=jnp.float32)

    out = dino_vision_tower_forward(images, params)
    out = jax.block_until_ready(out)

    assert out.shape == (2, 2, 1, NUM_PATCHES, HIDDEN), out.shape
    assert bool(jnp.all(jnp.isfinite(out)))
    print("KERNEL_OK")
</pallas_src>

<mosaic_0001>
module attributes {stable_mosaic.version = 11 : i64} {
  func.func @_fused_tower_kernel(%arg0: memref<32x256xbf16, #tpu.memory_space<vmem>>, %arg1: memref<256x128xbf16, #tpu.memory_space<vmem>>, %arg2: memref<1x8x128xf32, #tpu.memory_space<vmem>>, %arg3: memref<1x1x8xf32, #tpu.memory_space<vmem>>, %arg4: memref<1x1x128xf32, #tpu.memory_space<vmem>>, %arg5: memref<1x1x128xf32, #tpu.memory_space<vmem>>, %arg6: memref<1x128x384xbf16, #tpu.memory_space<vmem>>, %arg7: memref<1x1x384xf32, #tpu.memory_space<vmem>>, %arg8: memref<1x128x128xbf16, #tpu.memory_space<vmem>>, %arg9: memref<1x1x128xf32, #tpu.memory_space<vmem>>, %arg10: memref<1x1x128xf32, #tpu.memory_space<vmem>>, %arg11: memref<1x1x128xf32, #tpu.memory_space<vmem>>, %arg12: memref<1x1x128xf32, #tpu.memory_space<vmem>>, %arg13: memref<1x128x512xbf16, #tpu.memory_space<vmem>>, %arg14: memref<1x1x512xf32, #tpu.memory_space<vmem>>, %arg15: memref<1x512x128xbf16, #tpu.memory_space<vmem>>, %arg16: memref<1x1x128xf32, #tpu.memory_space<vmem>>, %arg17: memref<1x1x128xf32, #tpu.memory_space<vmem>>, %arg18: memref<4x4x128xf32, #tpu.memory_space<vmem>>) attributes {dimension_semantics = [], scalar_prefetch = 0 : i64, scratch_operands = 0 : i64, tpu.core_type = #tpu.core_type<tc>} {
    %c0 = arith.constant 0 : index
    %c0_0 = arith.constant 0 : index
    %0 = vector.load %arg0[%c0, %c0_0] : memref<32x256xbf16, #tpu.memory_space<vmem>>, vector<32x256xbf16>
    %c0_1 = arith.constant 0 : index
    %c0_2 = arith.constant 0 : index
    %1 = vector.load %arg1[%c0_1, %c0_2] : memref<256x128xbf16, #tpu.memory_space<vmem>>, vector<256x128xbf16>
    %cst = arith.constant dense<0.000000e+00> : vector<32x128xf32>
    %2 = tpu.matmul %0, %1, %cst {dimension_numbers = #tpu.dot_dimension_numbers<[1], [0], [0], [1], [0, 0, 1, 1], [], []>} : vector<32x256xbf16>, vector<256x128xbf16>, vector<32x128xf32> -> vector<32x128xf32>
    %3 = vector.shape_cast %2 : vector<32x128xf32> to vector<4x8x128xf32>
    %c0_3 = arith.constant 0 : index
    %c0_4 = arith.constant 0 : index
    %c0_5 = arith.constant 0 : index
    %4 = vector.load %arg2[%c0_3, %c0_4, %c0_5] : memref<1x8x128xf32, #tpu.memory_space<vmem>>, vector<1x8x128xf32>
    %5 = vector.broadcast %4 : vector<1x8x128xf32> to vector<4x8x128xf32>
    %6 = arith.addf %3, %5 : vector<4x8x128xf32>
    %c0_6 = arith.constant 0 : index
    %c0_7 = arith.constant 0 : index
    %c0_8 = arith.constant 0 : index
    %7 = vector.load %arg3[%c0_6, %c0_7, %c0_8] : memref<1x1x8xf32, #tpu.memory_space<vmem>>, vector<1x1x8xf32>
    %c0_9 = arith.constant 0 : index
    %c0_10 = arith.constant 0 : index
    %c0_11 = arith.constant 0 : index
    %8 = vector.load %arg4[%c0_9, %c0_10, %c0_11] : memref<1x1x128xf32, #tpu.memory_space<vmem>>, vector<1x1x128xf32>
    %9 = vector.shape_cast %8 : vector<1x1x128xf32> to vector<1x128xf32>
    %c0_12 = arith.constant 0 : index
    %c0_13 = arith.constant 0 : index
    %c0_14 = arith.constant 0 : index
    %10 = vector.load %arg5[%c0_12, %c0_13, %c0_14] : memref<1x1x128xf32, #tpu.memory_space<vmem>>, vector<1x1x128xf32>
    %11 = vector.shape_cast %10 : vector<1x1x128xf32> to vector<1x128xf32>
    %cst_15 = arith.constant dense<0.000000e+00> : vector<4x8xf32>
    %12 = vector.multi_reduction <add>, %6, %cst_15 [2] : vector<4x8x128xf32> to vector<4x8xf32>
    %13 = vector.shape_cast %12 : vector<4x8xf32> to vector<4x8x1xf32>
    %cst_16 = arith.constant 1.280000e+02 : f32
    %14 = vector.broadcast %cst_16 : f32 to vector<4x8x1xf32>
    %15 = arith.divf %13, %14 : vector<4x8x1xf32>
    %16 = vector.broadcast %15 : vector<4x8x1xf32> to vector<4x8x128xf32>
    %17 = arith.subf %6, %16 : vector<4x8x128xf32>
    %18 = arith.mulf %17, %17 : vector<4x8x128xf32>
    %cst_17 = arith.constant dense<0.000000e+00> : vector<4x8xf32>
    %19 = vector.multi_reduction <add>, %18, %cst_17 [2] : vector<4x8x128xf32> to vector<4x8xf32>
    %20 = vector.shape_cast %19 : vector<4x8xf32> to vector<4x8x1xf32>
    %cst_18 = arith.constant 1.280000e+02 : f32
    %21 = vector.broadcast %cst_18 : f32 to vector<4x8x1xf32>
    %22 = arith.divf %20, %21 : vector<4x8x1xf32>
    %23 = vector.broadcast %15 : vector<4x8x1xf32> to vector<4x8x128xf32>
    %24 = arith.subf %6, %23 : vector<4x8x128xf32>
    %cst_19 = arith.constant 9.99999997E-7 : f32
    %25 = vector.broadcast %cst_19 : f32 to vector<4x8x1xf32>
    %26 = arith.addf %22, %25 : vector<4x8x1xf32>
    %27 = math.rsqrt %26 : vector<4x8x1xf32>
    %28 = vector.broadcast %27 : vector<4x8x1xf32> to vector<4x8x128xf32>
    %29 = arith.mulf %24, %28 : vector<4x8x128xf32>
    %30 = vector.shape_cast %9 : vector<1x128xf32> to vector<1x1x128xf32>
    %31 = vector.broadcast %30 : vector<1x1x128xf32> to vector<4x8x128xf32>
    %32 = arith.mulf %29, %31 : vector<4x8x128xf32>
    %33 = vector.shape_cast %11 : vector<1x128xf32> to vector<1x1x128xf32>
    %34 = vector.broadcast %33 : vector<1x1x128xf32> to vector<4x8x128xf32>
    %35 = arith.addf %32, %34 : vector<4x8x128xf32>
    %36 = vector.shape_cast %35 : vector<4x8x128xf32> to vector<32x128xf32>
    %37 = arith.truncf %36 : vector<32x128xf32> to vector<32x128xbf16>
    %c0_20 = arith.constant 0 : index
    %c0_21 = arith.constant 0 : index
    %c0_22 = arith.constant 0 : index
    %38 = vector.load %arg6[%c0_20, %c0_21, %c0_22] : memref<1x128x384xbf16, #tpu.memory_space<vmem>>, vector<1x128x384xbf16>
    %39 = vector.shape_cast %38 : vector<1x128x384xbf16> to vector<128x384xbf16>
    %cst_23 = arith.constant dense<0.000000e+00> : vector<32x384xf32>
    %40 = tpu.matmul %37, %39, %cst_23 {dimension_numbers = #tpu.dot_dimension_numbers<[1], [0], [0], [1], [0, 0, 1, 1], [], []>} : vector<32x128xbf16>, vector<128x384xbf16>, vector<32x384xf32> -> vector<32x384xf32>
    %c0_24 = arith.constant 0 : index
    %c0_25 = arith.constant 0 : index
    %c0_26 = arith.constant 0 : index
    %41 = vector.load %arg7[%c0_24, %c0_25, %c0_26] : memref<1x1x384xf32, #tpu.memory_space<vmem>>, vector<1x1x384xf32>
    %42 = vector.shape_cast %41 : vector<1x1x384xf32> to vector<1x384xf32>
    %43 = vector.broadcast %42 : vector<1x384xf32> to vector<32x384xf32>
    %44 = arith.addf %40, %43 : vector<32x384xf32>
    %45 = vector.shape_cast %44 : vector<32x384xf32> to vector<4x8x384xf32>
    %46 = vector.extract_strided_slice %45 {offsets = [0, 0, 0], sizes = [4, 8, 64], strides = [1, 1, 1]} : vector<4x8x384xf32> to vector<4x8x64xf32>
    %47 = arith.truncf %46 : vector<4x8x64xf32> to vector<4x8x64xbf16>
    %48 = vector.extract_strided_slice %45 {offsets = [0, 0, 128], sizes = [4, 8, 64], strides = [1, 1, 1]} : vector<4x8x384xf32> to vector<4x8x64xf32>
    %49 = arith.truncf %48 : vector<4x8x64xf32> to vector<4x8x64xbf16>
    %50 = vector.extract_strided_slice %45 {offsets = [0, 0, 256], sizes = [4, 8, 64], strides = [1, 1, 1]} : vector<4x8x384xf32> to vector<4x8x64xf32>
    %51 = arith.truncf %50 : vector<4x8x64xf32> to vector<4x8x64xbf16>
    "tpu.trace_start"() <{level = 10 : i32, message = "bqd,bkd->bqk"}> : () -> ()
    %cst_27 = arith.constant dense<0.000000e+00> : vector<4x8x8xf32>
    %52 = tpu.matmul %47, %49, %cst_27 {dimension_numbers = #tpu.dot_dimension_numbers<[2], [2], [1], [1], [0, 0, 0, 1, 1, 1], [0], [0]>} : vector<4x8x64xbf16>, vector<4x8x64xbf16>, vector<4x8x8xf32> -> vector<4x8x8xf32>
    "tpu.trace_stop"() : () -> ()
    %cst_28 = arith.constant 1.250000e-01 : f32
    %53 = vector.broadcast %cst_28 : f32 to vector<4x8x8xf32>
    %54 = arith.mulf %52, %53 : vector<4x8x8xf32>
    %55 = vector.broadcast %7 : vector<1x1x8xf32> to vector<4x8x8xf32>
    %56 = arith.addf %54, %55 : vector<4x8x8xf32>
    %cst_29 = arith.constant dense<0xFF800000> : vector<4x8xf32>
    %57 = vector.multi_reduction <maximumf>, %56, %cst_29 [2] : vector<4x8x8xf32> to vector<4x8xf32>
    %58 = vector.shape_cast %57 : vector<4x8xf32> to vector<4x8x1xf32>
    %59 = vector.broadcast %58 : vector<4x8x1xf32> to vector<4x8x8xf32>
    %60 = arith.subf %56, %59 : vector<4x8x8xf32>
    %61 = math.exp %60 : vector<4x8x8xf32>
    %cst_30 = arith.constant dense<0.000000e+00> : vector<4x8xf32>
    %62 = vector.multi_reduction <add>, %61, %cst_30 [2] : vector<4x8x8xf32> to vector<4x8xf32>
    %63 = vector.shape_cast %62 : vector<4x8xf32> to vector<4x8x1xf32>
    %64 = tpu.reciprocal %63 {approx = true} : vector<4x8x1xf32> -> vector<4x8x1xf32>
    %65 = vector.broadcast %64 : vector<4x8x1xf32> to vector<4x8x8xf32>
    %66 = arith.mulf %61, %65 : vector<4x8x8xf32>
    %67 = arith.truncf %66 : vector<4x8x8xf32> to vector<4x8x8xbf16>
    "tpu.trace_start"() <{level = 10 : i32, message = "bqk,bkd->bqd"}> : () -> ()
    %cst_31 = arith.constant dense<0.000000e+00> : vector<4x8x64xf32>
    %68 = tpu.matmul %67, %51, %cst_31 {dimension_numbers = #tpu.dot_dimension_numbers<[2], [1], [1], [2], [0, 0, 0, 1, 1, 2], [0], [0]>} : vector<4x8x8xbf16>, vector<4x8x64xbf16>, vector<4x8x64xf32> -> vector<4x8x64xf32>
    "tpu.trace_stop"() : () -> ()
    %69 = vector.extract_strided_slice %45 {offsets = [0, 0, 64], sizes = [4, 8, 64], strides = [1, 1, 1]} : vector<4x8x384xf32> to vector<4x8x64xf32>
    %70 = arith.truncf %69 : vector<4x8x64xf32> to vector<4x8x64xbf16>
    %71 = vector.extract_strided_slice %45 {offsets = [0, 0, 192], sizes = [4, 8, 64], strides = [1, 1, 1]} : vector<4x8x384xf32> to vector<4x8x64xf32>
    %72 = arith.truncf %71 : vector<4x8x64xf32> to vector<4x8x64xbf16>
    %73 = vector.extract_strided_slice %45 {offsets = [0, 0, 320], sizes = [4, 8, 64], strides = [1, 1, 1]} : vector<4x8x384xf32> to vector<4x8x64xf32>
    %74 = arith.truncf %73 : vector<4x8x64xf32> to vector<4x8x64xbf16>
    "tpu.trace_start"() <{level = 10 : i32, message = "bqd,bkd->bqk"}> : () -> ()
    %cst_32 = arith.constant dense<0.000000e+00> : vector<4x8x8xf32>
    %75 = tpu.matmul %70, %72, %cst_32 {dimension_numbers = #tpu.dot_dimension_numbers<[2], [2], [1], [1], [0, 0, 0, 1, 1, 1], [0], [0]>} : vector<4x8x64xbf16>, vector<4x8x64xbf16>, vector<4x8x8xf32> -> vector<4x8x8xf32>
    "tpu.trace_stop"() : () -> ()
    %cst_33 = arith.constant 1.250000e-01 : f32
    %76 = vector.broadcast %cst_33 : f32 to vector<4x8x8xf32>
    %77 = arith.mulf %75, %76 : vector<4x8x8xf32>
    %78 = vector.broadcast %7 : vector<1x1x8xf32> to vector<4x8x8xf32>
    %79 = arith.addf %77, %78 : vector<4x8x8xf32>
    %cst_34 = arith.constant dense<0xFF800000> : vector<4x8xf32>
    %80 = vector.multi_reduction <maximumf>, %79, %cst_34 [2] : vector<4x8x8xf32> to vector<4x8xf32>
    %81 = vector.shape_cast %80 : vector<4x8xf32> to vector<4x8x1xf32>
    %82 = vector.broadcast %81 : vector<4x8x1xf32> to vector<4x8x8xf32>
    %83 = arith.subf %79, %82 : vector<4x8x8xf32>
    %84 = math.exp %83 : vector<4x8x8xf32>
    %cst_35 = arith.constant dense<0.000000e+00> : vector<4x8xf32>
    %85 = vector.multi_reduction <add>, %84, %cst_35 [2] : vector<4x8x8xf32> to vector<4x8xf32>
    %86 = vector.shape_cast %85 : vector<4x8xf32> to vector<4x8x1xf32>
    %87 = tpu.reciprocal %86 {approx = true} : vector<4x8x1xf32> -> vector<4x8x1xf32>
    %88 = vector.broadcast %87 : vector<4x8x1xf32> to vector<4x8x8xf32>
    %89 = arith.mulf %84, %88 : vector<4x8x8xf32>
    %90 = arith.truncf %89 : vector<4x8x8xf32> to vector<4x8x8xbf16>
    "tpu.trace_start"() <{level = 10 : i32, message = "bqk,bkd->bqd"}> : () -> ()
    %cst_36 = arith.constant dense<0.000000e+00> : vector<4x8x64xf32>
    %91 = tpu.matmul %90, %74, %cst_36 {dimension_numbers = #tpu.dot_dimension_numbers<[2], [1], [1], [2], [0, 0, 0, 1, 1, 2], [0], [0]>} : vector<4x8x8xbf16>, vector<4x8x64xbf16>, vector<4x8x64xf32> -> vector<4x8x64xf32>
    "tpu.trace_stop"() : () -> ()
    %92 = tpu.concatenate %68, %91 in 2 : vector<4x8x64xf32>, vector<4x8x64xf32> -> vector<4x8x128xf32>
    %93 = vector.shape_cast %92 : vector<4x8x128xf32> to vector<32x128xf32>
    %94 = arith.truncf %93 : vector<32x128xf32> to vector<32x128xbf16>
    %c0_37 = arith.constant 0 : index
    %c0_38 = arith.constant 0 : index
    %c0_39 = arith.constant 0 : index
    %95 = vector.load %arg8[%c0_37, %c0_38, %c0_39] : memref<1x128x128xbf16, #tpu.memory_space<vmem>>, vector<1x128x128xbf16>
    %96 = vector.shape_cast %95 : vector<1x128x128xbf16> to vector<128x128xbf16>
    %cst_40 = arith.constant dense<0.000000e+00> : vector<32x128xf32>
    %97 = tpu.matmul %94, %96, %cst_40 {dimension_numbers = #tpu.dot_dimension_numbers<[1], [0], [0], [1], [0, 0, 1, 1], [], []>} : vector<32x128xbf16>, vector<128x128xbf16>, vector<32x128xf32> -> vector<32x128xf32>
    %c0_41 = arith.constant 0 : index
    %c0_42 = arith.constant 0 : index
    %c0_43 = arith.constant 0 : index
    %98 = vector.load %arg9[%c0_41, %c0_42, %c0_43] : memref<1x1x128xf32, #tpu.memory_space<vmem>>, vector<1x1x128xf32>
    %99 = vector.shape_cast %98 : vector<1x1x128xf32> to vector<1x128xf32>
    %100 = vector.broadcast %99 : vector<1x128xf32> to vector<32x128xf32>
    %101 = arith.addf %97, %100 : vector<32x128xf32>
    %102 = vector.shape_cast %101 : vector<32x128xf32> to vector<4x8x128xf32>
    %c0_44 = arith.constant 0 : index
    %c0_45 = arith.constant 0 : index
    %c0_46 = arith.constant 0 : index
    %103 = vector.load %arg10[%c0_44, %c0_45, %c0_46] : memref<1x1x128xf32, #tpu.memory_space<vmem>>, vector<1x1x128xf32>
    %104 = vector.shape_cast %103 : vector<1x1x128xf32> to vector<1x128xf32>
    %105 = vector.shape_cast %104 : vector<1x128xf32> to vector<1x1x128xf32>
    %106 = vector.broadcast %105 : vector<1x1x128xf32> to vector<4x8x128xf32>
    %107 = arith.mulf %106, %102 : vector<4x8x128xf32>
    %108 = arith.addf %6, %107 : vector<4x8x128xf32>
    %c0_47 = arith.constant 0 : index
    %c0_48 = arith.constant 0 : index
    %c0_49 = arith.constant 0 : index
    %109 = vector.load %arg11[%c0_47, %c0_48, %c0_49] : memref<1x1x128xf32, #tpu.memory_space<vmem>>, vector<1x1x128xf32>
    %110 = vector.shape_cast %109 : vector<1x1x128xf32> to vector<1x128xf32>
    %c0_50 = arith.constant 0 : index
    %c0_51 = arith.constant 0 : index
    %c0_52 = arith.constant 0 : index
    %111 = vector.load %arg12[%c0_50, %c0_51, %c0_52] : memref<1x1x128xf32, #tpu.memory_space<vmem>>, vector<1x1x128xf32>
    %112 = vector.shape_cast %111 : vector<1x1x128xf32> to vector<1x128xf32>
    %cst_53 = arith.constant dense<0.000000e+00> : vector<4x8xf32>
    %113 = vector.multi_reduction <add>, %108, %cst_53 [2] : vector<4x8x128xf32> to vector<4x8xf32>
    %114 = vector.shape_cast %113 : vector<4x8xf32> to vector<4x8x1xf32>
    %cst_54 = arith.constant 1.280000e+02 : f32
    %115 = vector.broadcast %cst_54 : f32 to vector<4x8x1xf32>
    %116 = arith.divf %114, %115 : vector<4x8x1xf32>
    %117 = vector.broadcast %116 : vector<4x8x1xf32> to vector<4x8x128xf32>
    %118 = arith.subf %108, %117 : vector<4x8x128xf32>
    %119 = arith.mulf %118, %118 : vector<4x8x128xf32>
    %cst_55 = arith.constant dense<0.000000e+00> : vector<4x8xf32>
    %120 = vector.multi_reduction <add>, %119, %cst_55 [2] : vector<4x8x128xf32> to vector<4x8xf32>
    %121 = vector.shape_cast %120 : vector<4x8xf32> to vector<4x8x1xf32>
    %cst_56 = arith.constant 1.280000e+02 : f32
    %122 = vector.broadcast %cst_56 : f32 to vector<4x8x1xf32>
    %123 = arith.divf %121, %122 : vector<4x8x1xf32>
    %124 = vector.broadcast %116 : vector<4x8x1xf32> to vector<4x8x128xf32>
    %125 = arith.subf %108, %124 : vector<4x8x128xf32>
    %cst_57 = arith.constant 9.99999997E-7 : f32
    %126 = vector.broadcast %cst_57 : f32 to vector<4x8x1xf32>
    %127 = arith.addf %123, %126 : vector<4x8x1xf32>
    %128 = math.rsqrt %127 : vector<4x8x1xf32>
    %129 = vector.broadcast %128 : vector<4x8x1xf32> to vector<4x8x128xf32>
    %130 = arith.mulf %125, %129 : vector<4x8x128xf32>
    %131 = vector.shape_cast %110 : vector<1x128xf32> to vector<1x1x128xf32>
    %132 = vector.broadcast %131 : vector<1x1x128xf32> to vector<4x8x128xf32>
    %133 = arith.mulf %130, %132 : vector<4x8x128xf32>
    %134 = vector.shape_cast %112 : vector<1x128xf32> to vector<1x1x128xf32>
    %135 = vector.broadcast %134 : vector<1x1x128xf32> to vector<4x8x128xf32>
    %136 = arith.addf %133, %135 : vector<4x8x128xf32>
    %137 = vector.shape_cast %136 : vector<4x8x128xf32> to vector<32x128xf32>
    %138 = arith.truncf %137 : vector<32x128xf32> to vector<32x128xbf16>
    %c0_58 = arith.constant 0 : index
    %c0_59 = arith.constant 0 : index
    %c0_60 = arith.constant 0 : index
    %139 = vector.load %arg13[%c0_58, %c0_59, %c0_60] : memref<1x128x512xbf16, #tpu.memory_space<vmem>>, vector<1x128x512xbf16>
    %140 = vector.shape_cast %139 : vector<1x128x512xbf16> to vector<128x512xbf16>
    %cst_61 = arith.constant dense<0.000000e+00> : vector<32x512xf32>
    %141 = tpu.matmul %138, %140, %cst_61 {dimension_numbers = #tpu.dot_dimension_numbers<[1], [0], [0], [1], [0, 0, 1, 1], [], []>} : vector<32x128xbf16>, vector<128x512xbf16>, vector<32x512xf32> -> vector<32x512xf32>
    %c0_62 = arith.constant 0 : index
    %c0_63 = arith.constant 0 : index
    %c0_64 = arith.constant 0 : index
    %142 = vector.load %arg14[%c0_62, %c0_63, %c0_64] : memref<1x1x512xf32, #tpu.memory_space<vmem>>, vector<1x1x512xf32>
    %143 = vector.shape_cast %142 : vector<1x1x512xf32> to vector<1x512xf32>
    %144 = vector.broadcast %143 : vector<1x512xf32> to vector<32x512xf32>
    %145 = arith.addf %141, %144 : vector<32x512xf32>
    %cst_65 = arith.constant 5.000000e-01 : f32
    %146 = vector.broadcast %cst_65 : f32 to vector<32x512xf32>
    %147 = arith.mulf %146, %145 : vector<32x512xf32>
    %cst_66 = arith.constant 4.471500e-02 : f32
    %148 = vector.broadcast %cst_66 : f32 to vector<32x512xf32>
    %149 = arith.mulf %148, %145 : vector<32x512xf32>
    %150 = arith.mulf %149, %145 : vector<32x512xf32>
    %151 = arith.mulf %150, %145 : vector<32x512xf32>
    %152 = arith.addf %145, %151 : vector<32x512xf32>
    %cst_67 = arith.constant 0.797884583 : f32
    %153 = vector.broadcast %cst_67 : f32 to vector<32x512xf32>
    %154 = arith.mulf %153, %152 : vector<32x512xf32>
    %155 = math.tanh %154 : vector<32x512xf32>
    %cst_68 = arith.constant 1.000000e+00 : f32
    %156 = vector.broadcast %cst_68 : f32 to vector<32x512xf32>
    %157 = arith.addf %156, %155 : vector<32x512xf32>
    %158 = arith.mulf %147, %157 : vector<32x512xf32>
    %159 = arith.truncf %158 : vector<32x512xf32> to vector<32x512xbf16>
    %c0_69 = arith.constant 0 : index
    %c0_70 = arith.constant 0 : index
    %c0_71 = arith.constant 0 : index
    %160 = vector.load %arg15[%c0_69, %c0_70, %c0_71] : memref<1x512x128xbf16, #tpu.memory_space<vmem>>, vector<1x512x128xbf16>
    %161 = vector.shape_cast %160 : vector<1x512x128xbf16> to vector<512x128xbf16>
    %cst_72 = arith.constant dense<0.000000e+00> : vector<32x128xf32>
    %162 = tpu.matmul %159, %161, %cst_72 {dimension_numbers = #tpu.dot_dimension_numbers<[1], [0], [0], [1], [0, 0, 1, 1], [], []>} : vector<32x512xbf16>, vector<512x128xbf16>, vector<32x128xf32> -> vector<32x128xf32>
    %c0_73 = arith.constant 0 : index
    %c0_74 = arith.constant 0 : index
    %c0_75 = arith.constant 0 : index
    %163 = vector.load %arg16[%c0_73, %c0_74, %c0_75] : memref<1x1x128xf32, #tpu.memory_space<vmem>>, vector<1x1x128xf32>
    %164 = vector.shape_cast %163 : vector<1x1x128xf32> to vector<1x128xf32>
    %165 = vector.broadcast %164 : vector<1x128xf32> to vector<32x128xf32>
    %166 = arith.addf %162, %165 : vector<32x128xf32>
    %167 = vector.shape_cast %166 : vector<32x128xf32> to vector<4x8x128xf32>
    %c0_76 = arith.constant 0 : index
    %c0_77 = arith.constant 0 : index
    %c0_78 = arith.constant 0 : index
    %168 = vector.load %arg17[%c0_76, %c0_77, %c0_78] : memref<1x1x128xf32, #tpu.memory_space<vmem>>, vector<1x1x128xf32>
    %169 = vector.shape_cast %168 : vector<1x1x128xf32> to vector<1x128xf32>
    %170 = vector.shape_cast %169 : vector<1x128xf32> to vector<1x1x128xf32>
    %171 = vector.broadcast %170 : vector<1x1x128xf32> to vector<4x8x128xf32>
    %172 = arith.mulf %171, %167 : vector<4x8x128xf32>
    %173 = arith.addf %108, %172 : vector<4x8x128xf32>
    %174 = vector.extract_strided_slice %173 {offsets = [0, 0, 0], sizes = [4, 4, 128], strides = [1, 1, 1]} : vector<4x8x128xf32> to vector<4x4x128xf32>
    %c0_79 = arith.constant 0 : index
    %c0_80 = arith.constant 0 : index
    %c0_81 = arith.constant 0 : index
    %175 = vector.load %arg18[%c0_79, %c0_80, %c0_81] : memref<4x4x128xf32, #tpu.memory_space<vmem>>, vector<4x4x128xf32>
    tpu.vector_store %arg18[%c0_79, %c0_80, %c0_81], %174 {strides = array<i32>} : memref<4x4x128xf32, #tpu.memory_space<vmem>>, vector<4x4x128xf32>,
    return
  }
}

</mosaic_0001>

<bundles_post_ra>
// kernel: dino_vision_tower_forward.1
= control target key start
LH: loop header
LB: loop body
LE: loop exit
PB: predicated region body
PF: predicated region fallthrough
CT: control target
= control target key end

     0   :  { %s3797_s0 = inlined_call_operand.vmem [shape: bf16[32,256], index: 0, kind: input, shape index: {}]   ;;  %s3798_s1 = inlined_call_operand.vmem [shape: bf16[256,128], index: 1, kind: input, shape index: {}]   ;;  %s3799_s2 = inlined_call_operand.vmem [shape: f32[1,8,128], index: 2, kind: input, shape index: {}]   ;;  %s3800_s3 = inlined_call_operand.vmem [shape: f32[1,1,8], index: 3, kind: input, shape index: {}]   ;;  %s3801_s4 = inlined_call_operand.vmem [shape: f32[1,1,128], index: 4, kind: input, shape index: {}]   ;;  %s3802_s5 = inlined_call_operand.vmem [shape: f32[1,1,128], index: 5, kind: input, shape index: {}]   ;;  %s3803_s6 = inlined_call_operand.vmem [shape: bf16[1,128,384], index: 6, kind: input, shape index: {}]   ;;  %s3804_s7 = inlined_call_operand.vmem [shape: f32[1,1,384], index: 7, kind: input, shape index: {}]   ;;  %s3805_s8 = inlined_call_operand.vmem [shape: bf16[1,128,128], index: 8, kind: input, shape index: {}]   ;;  %s3806_s9 = inlined_call_operand.vmem [shape: f32[1,1,128], index: 9, kind: input, shape index: {}]   ;;  %s3807_s10 = inlined_call_operand.vmem [shape: f32[1,1,128], index: 10, kind: input, shape index: {}]   ;;  %s3808_s11 = inlined_call_operand.vmem [shape: f32[1,1,128], index: 11, kind: input, shape index: {}]   ;;  %s3809_s12 = inlined_call_operand.vmem [shape: f32[1,1,128], index: 12, kind: input, shape index: {}]   ;;  %s3810_s13 = inlined_call_operand.vmem [shape: bf16[1,128,512], index: 13, kind: input, shape index: {}]   ;;  %s3811_s14 = inlined_call_operand.vmem [shape: f32[1,1,512], index: 14, kind: input, shape index: {}]   ;;  %s3812_s15 = inlined_call_operand.vmem [shape: bf16[1,512,128], index: 15, kind: input, shape index: {}]   ;;  %s3813_s16 = inlined_call_operand.vmem [shape: f32[1,1,128], index: 16, kind: input, shape index: {}]   ;;  %s3814_s17 = inlined_call_operand.vmem [shape: f32[1,1,128], index: 17, kind: input, shape index: {}]   ;;  %s3815_s18 = inlined_call_operand.hbm [shape: f32[4,4,128], index: 18, kind: output, shape index: {}]  }
   0x1   :  { %3818 = sst [smem:[#allocation5_spill]] %s3797_s0 }
   0x2   :  { %3819 = sst [smem:[#allocation6_spill]] %s3798_s1 }
   0x3   :  { %3820 = sst [smem:[#allocation7_spill]] %s3799_s2 }
   0x4   :  { %s3821_s29 = sld [smem:[#allocation6_spill]] }
   0xa   :  { %v2591_v0 = vld [vmem:[%s3821_s29 + $0x38] sm:$0xff]  ;;  %v2590_v2 = vld [vmem:[%s3821_s29 + $0x30] sm:$0xff]  ;;  %v2589_v4 = vld [vmem:[%s3821_s29 + $0x28] sm:$0xff] }
   0xb   :  { %v2599_v1 = vld [vmem:[%s3821_s29 + $0x78] sm:$0xff]  ;;  %213 = vmatpush.bf16.msra.mxu0 %v2591_v0  ;;  %v2598_v3 = vld [vmem:[%s3821_s29 + $0x70] sm:$0xff]  ;;  %v2597_v5 = vld [vmem:[%s3821_s29 + $0x68] sm:$0xff] }
   0xc   :  { %232 = vmatpush.bf16.msra.mxu1 %v2599_v1  ;;  %v2588_v6 = vld [vmem:[%s3821_s29 + $0x20] sm:$0xff] }
   0xd   :  { %v2596_v7 = vld [vmem:[%s3821_s29 + $0x60] sm:$0xff] }
   0xf   :  { %214 = vmatpush.bf16.msra.mxu0 %v2590_v2 }
  0x10   :  { %233 = vmatpush.bf16.msra.mxu1 %v2598_v3 }
  0x13   :  { %215 = vmatpush.bf16.msra.mxu0 %v2589_v4 }
  0x14   :  { %234 = vmatpush.bf16.msra.mxu1 %v2597_v5 }
  0x15   :  { %23 = vsyncpa [#allocation3], 0  ;;  %v2587_v8 = vld [vmem:[%s3821_s29 + $0x18] sm:$0xff]  ;;  %v2586_v10 = vld [vmem:[%s3821_s29 + $0x10] sm:$0xff]  ;;  %s3822_s20 = sld [smem:[#allocation5_spill]]  ;;  %v2827_v45 = vmov 128.0  }
  0x16   :  { %v2595_v9 = vld [vmem:[%s3821_s29 + $0x58] sm:$0xff]  ;;  %v2594_v11 = vld [vmem:[%s3821_s29 + $0x50] sm:$0xff]  ;;  %v2585_v12 = vld [vmem:[%s3821_s29 + $0x8] sm:$0xff]  ;;  %s3823_s2 = sld [smem:[#allocation7_spill]]  ;;  %2719 = vrcp.f32 %v2827_v45  ;;  %vm739_vm13 = vcmask 1043456   ;;  %vm599_vm14 = vcmask 523264  }
  0x17   :  { %216 = vmatpush.bf16.msra.mxu0 %v2588_v6  ;;  %v2593_v13 = vld [vmem:[%s3821_s29 + $0x48] sm:$0xff]  ;;  %v2584_v14 = vld [vmem:[%s3821_s29] sm:$0xff]  ;;  %v2622_v5 = vld [vmem:[%s3803_s6 + $0xb0] sm:$0xf0]  ;;  %vm687_vm15 = vcmask 64512  }
  0x18   :  { %235 = vmatpush.bf16.msra.mxu1 %v2596_v7  ;;  %v2592_v15 = vld [vmem:[%s3821_s29 + $0x40] sm:$0xff]  ;;  %v2266_v4 = vld [vmem:[%s3803_s6 + $0xa8] sm:$0xf]  ;;  %v2621_v6 = vld [vmem:[%s3803_s6 + $0xac] sm:$0xf] }
  0x19   :  { %v2267_v7 = vor.u32 %v2622_v5, %v2266_v4  ;;  %v2610_v45 = vld [vmem:[%s3803_s6 + $0x50] sm:$0xf0]  ;;  %v2604_v4 = vld [vmem:[%s3803_s6 + $0x20] sm:$0xf0]  ;;  %v2603_v5 = vld [vmem:[%s3803_s6 + $0x1c] sm:$0xf] }
  0x1b   :  { %217 = vmatpush.bf16.msra.mxu0 %v2587_v8  ;;  %v2102_v16 = vld [vmem:[%s3822_s20] sm:$0xf]  ;;  %v2581_v17 = vld [vmem:[%s3822_s20 + $0x4] sm:$0xf0]  ;;  %v2580_v18 = vld [vmem:[%s3822_s20 + $0x4] sm:$0xf]  ;;  %530 = vmatpush.bf16.msra.mxu2 %v2267_v7 }
  0x1c   :  { %236 = vmatpush.bf16.msra.mxu1 %v2595_v9  ;;  %v2104_v19 = vld [vmem:[%s3822_s20 + $0x8] sm:$0xf0]  ;;  %v2103_v20 = vor.u32 %v2581_v17, %v2102_v16  ;;  %v2110_v22 = vld [vmem:[%s3822_s20 + $0x10] sm:$0xf]  ;;  %v2583_v23 = vld [vmem:[%s3822_s20 + $0x14] sm:$0xf0]  ;;  %v2720_v46 = vpop.eup %2719 }
  0x1d   :  { %v2107_v21 = vor.u32 %v2580_v18, %v2104_v19  ;;  %v2582_v24 = vld [vmem:[%s3822_s20 + $0x14] sm:$0xf]  ;;  %v2112_v25 = vld [vmem:[%s3822_s20 + $0x18] sm:$0xf0]  ;;  %v2111_v26 = vor.u32 %v2583_v23, %v2110_v22  ;;  %v251_v30 = vld [vmem:[%s3823_s2] sm:$0xff]  ;;  %v268_v47 = vmul.f32 128.0, %v2720_v46  ;;  %vm272_vm0 = vweird.f32 %v2720_v46 }
  0x1e   :  { %v2115_v27 = vor.u32 %v2582_v24, %v2112_v25  ;;  %v2268_v8 = vld [vmem:[%s3803_s6 + $0xb4] sm:$0xf0]  ;;  %v2274_v9 = vld [vmem:[%s3803_s6 + $0xb0] sm:$0xf]  ;;  %v2256_v17 = vld [vmem:[%s3803_s6 + $0x9c] sm:$0xf0] }
  0x1f   :  { %218 = vmatpush.bf16.msra.mxu0 %v2586_v10  ;;  %v269_v48 = vsub.f32 1.0, %v268_v47  ;;  %v2623_v10 = vld [vmem:[%s3803_s6 + $0xb8] sm:$0xf0]  ;;  %v2262_v18 = vld [vmem:[%s3803_s6 + $0x98] sm:$0xf] }
  0x20   :  { %237 = vmatpush.bf16.msra.mxu1 %v2594_v11  ;;  %v2271_v11 = vor.u32 %v2621_v6, %v2268_v8  ;;  %v2620_v19 = vld [vmem:[%s3803_s6 + $0xa0] sm:$0xf0]  ;;  %v2242_v22 = vld [vmem:[%s3803_s6 + $0x78] sm:$0xf]  ;;  %v2615_v24 = vld [vmem:[%s3803_s6 + $0x7c] sm:$0xf] }
  0x21   :  { %v270_v49 = vmul.f32 %v2720_v46, %v269_v48  ;;  %v2616_v23 = vld [vmem:[%s3803_s6 + $0x80] sm:$0xf0]  ;;  %v2220_v48 = vld [vmem:[%s3803_s6 + $0x54] sm:$0xf0]  ;;  %v2196_v7 = vld [vmem:[%s3803_s6 + $0x24] sm:$0xf0] }
  0x22   :  { %549 = vmatpush.bf16.msra.mxu3 %v2271_v11  ;;  %v2243_v25 = vor.u32 %v2616_v23, %v2242_v22  ;;  %v2202_v8 = vld [vmem:[%s3803_s6 + $0x20] sm:$0xf] }
  0x23   :  { %219 = vmatpush.bf16.msra.mxu0 %v2585_v12  ;;  %v271_v50 = vadd.f32 %v2720_v46, %v270_v49  ;;  %v2275_v12 = vor.u32 %v2623_v10, %v2274_v9  ;;  %v2226_v49 = vld [vmem:[%s3803_s6 + $0x50] sm:$0xf]  ;;  %v2605_v9 = vld [vmem:[%s3803_s6 + $0x28] sm:$0xf0]  ;;  %v2199_v10 = vor.u32 %v2603_v5, %v2196_v7 }
  0x24   :  { %238 = vmatpush.bf16.msra.mxu1 %v2593_v13  ;;  %v2254_v13 = vld [vmem:[%s3803_s6 + $0x90] sm:$0xf]  ;;  %v2203_v11 = vor.u32 %v2605_v9, %v2202_v8 }
  0x25   :  { %v3013_v51 = vsel %vm272_vm0, %v2720_v46, %v271_v50  ;;  %v2609_v46 = vld [vmem:[%s3803_s6 + $0x4c] sm:$0xf]  ;;  %v2611_v50 = vld [vmem:[%s3803_s6 + $0x58] sm:$0xf0] }
  0x27   :  { %220 = vmatpush.bf16.msra.mxu0 %v2584_v14  ;;  %v2619_v14 = vld [vmem:[%s3803_s6 + $0x98] sm:$0xf0] }
  0x28   :  { %239 = vmatpush.bf16.msra.mxu1 %v2592_v15  ;;  %v2618_v15 = vld [vmem:[%s3803_s6 + $0x94] sm:$0xf]  ;;  %v2255_v16 = vor.u32 %v2619_v14, %v2254_v13  ;;  %v2182_v14 = vld [vmem:[%s3803_s6] sm:$0xf] }
  0x2a   :  { %221 = vmatmul.bf16.vlgmr.msra.gmra.mxu0 %v2103_v20  ;;  %v2259_v20 = vor.u32 %v2618_v15, %v2256_v17  ;;  %531 = vmatpush.bf16.msra.mxu2 %v2255_v16  ;;  %v2601_v15 = vld [vmem:[%s3803_s6 + $0x8] sm:$0xf0]  ;;  %v2600_v16 = vld [vmem:[%s3803_s6 + $0x4] sm:$0xf] }
  0x2b   :  { %240 = vmatmul.bf16.vlgmr.msra.gmra.mxu1 %v2107_v21  ;;  %568 = vmatpush.bf16.msrb.mxu0 %v2275_v12  ;;  %v2263_v21 = vor.u32 %v2620_v19, %v2262_v18  ;;  %v2183_v17 = vor.u32 %v2601_v15, %v2182_v14  ;;  %v2184_v18 = vld [vmem:[%s3803_s6 + $0xc] sm:$0xf0]  ;;  %v2190_v19 = vld [vmem:[%s3803_s6 + $0x8] sm:$0xf] }
  0x2c   :  { %550 = vmatpush.bf16.msra.mxu3 %v2259_v20  ;;  %v2602_v20 = vld [vmem:[%s3803_s6 + $0x10] sm:$0xf0]  ;;  %v2187_v22 = vor.u32 %v2600_v16, %v2184_v18 }
  0x2d   :  { %v2191_v23 = vor.u32 %v2602_v20, %v2190_v19  ;;  %v394_v20 = vld [vmem:[%s3804_s7] sm:$0x7] }
  0x2e   :  { %532 = vmatpush.bf16.msra.mxu2 %v2243_v25 }
  0x2f   :  { %569 = vmatpush.bf16.msrb.mxu0 %v2263_v21 }
  0x3a   :  { %226 = vmatmul.bf16.gmra.mxu0 %v2111_v26  ;;  %v2244_v26 = vld [vmem:[%s3803_s6 + $0x84] sm:$0xf0] }
  0x3b   :  { %245 = vmatmul.bf16.gmra.mxu1 %v2115_v27  ;;  %v2250_v27 = vld [vmem:[%s3803_s6 + $0x80] sm:$0xf] }
  0xa7   :  { %v222_v28 = vpop.f32.mrf.mxu0 }
  0xa8   :  { %v241_v29 = vpop.f32.mrf.mxu1 }
  0xa9   :  { %v242_v31 = vadd.f32 %v241_v29, %v222_v28  ;;  %v2617_v28 = vld [vmem:[%s3803_s6 + $0x88] sm:$0xf0]  ;;  %v2247_v29 = vor.u32 %v2615_v24, %v2244_v26 }
  0xab   :  { %v3001_v32 = vadd.f32 %v251_v30, %v242_v31  ;;  %551 = vmatpush.bf16.msra.mxu3 %v2247_v29  ;;  %v2230_v31 = vld [vmem:[%s3803_s6 + $0x60] sm:$0xf] }
  0xad   :  { %259 = vadd.xlane.f32.xlu0 %v3001_v32 }
  0xaf   :  { %v224_v33 = vpop.f32.mrf.mxu0 }
  0xb0   :  { %v243_v34 = vpop.f32.mrf.mxu1 }
  0xb1   :  { %v244_v35 = vadd.f32 %v243_v34, %v224_v33  ;;  %v2613_v33 = vld [vmem:[%s3803_s6 + $0x68] sm:$0xf0]  ;;  %v2612_v34 = vld [vmem:[%s3803_s6 + $0x64] sm:$0xf] }
  0xb3   :  { %v3004_v36 = vadd.f32 %v251_v30, %v244_v35  ;;  %v2231_v35 = vor.u32 %v2613_v33, %v2230_v31 }
  0xb5   :  { %261 = vadd.xlane.f32.xlu0 %v3004_v36  ;;  %533 = vmatpush.bf16.msra.mxu2 %v2231_v35 }
  0xb7   :  { %v227_v37 = vpop.f32.mrf.mxu0 }
  0xb8   :  { %v246_v38 = vpop.f32.mrf.mxu1 }
  0xb9   :  { %v247_v39 = vadd.f32 %v246_v38, %v227_v37  ;;  %v2232_v37 = vld [vmem:[%s3803_s6 + $0x6c] sm:$0xf0]  ;;  %v2238_v38 = vld [vmem:[%s3803_s6 + $0x68] sm:$0xf] }
  0xbb   :  { %v3007_v40 = vadd.f32 %v251_v30, %v247_v39  ;;  %v2614_v39 = vld [vmem:[%s3803_s6 + $0x70] sm:$0xf0] }
  0xbd   :  { %263 = vadd.xlane.f32.xlu1 %v3007_v40 }
  0xbf   :  { %v229_v41 = vpop.f32.mrf.mxu0 }
  0xc0   :  { %v248_v42 = vpop.f32.mrf.mxu1 }
  0xc1   :  { %v249_v43 = vadd.f32 %v248_v42, %v229_v41  ;;  %v2235_v41 = vor.u32 %v2612_v34, %v2232_v37  ;;  %v2239_v42 = vor.u32 %v2614_v39, %v2238_v38 }
  0xc3   :  { %v3010_v44 = vadd.f32 %v251_v30, %v249_v43  ;;  %v2251_v30 = vor.u32 %v2617_v28, %v2250_v27  ;;  %552 = vmatpush.bf16.msra.mxu3 %v2235_v41  ;;  %v2218_v43 = vld [vmem:[%s3803_s6 + $0x48] sm:$0xf] }
  0xc4   :  { %v2219_v47 = vor.u32 %v2610_v45, %v2218_v43 }
  0xc5   :  { %265 = vadd.xlane.f32.xlu1 %v3010_v44  ;;  %570 = vmatpush.bf16.msrb.mxu0 %v2251_v30 }
  0xc6   :  { %534 = vmatpush.bf16.msra.mxu2 %v2219_v47 }
  0xc9   :  { %571 = vmatpush.bf16.msrb.mxu0 %v2239_v42 }
 0x120   :  { %v260_v52 = vpop.xlane.xlu0 %259 }
 0x121   :  { %v274_v53 = vmul.f32 %v3013_v51, %v260_v52  ;;  %v2223_v52 = vor.u32 %v2609_v46, %v2220_v48 }
 0x123   :  { %v3017_v54 = vsub.f32 %v3001_v32, %v274_v53  ;;  %v2227_v53 = vor.u32 %v2611_v50, %v2226_v49  ;;  %553 = vmatpush.bf16.msra.mxu3 %v2223_v52  ;;  %v2710_v52 = vld [vmem:[%s3801_s4] ss:$0 sm:$0xff]  ;;  %s2088_s4 = sshll.u32 %s3815_s18, 4  ;;  %s2089_s4 = int_to_ptr.hbm [resolvable:$true] %s2088_s4 }
 0x125   :  { %v282_v55 = vmul.f32 %v3017_v54, %v3017_v54  ;;  %572 = vmatpush.bf16.msrb.mxu0 %v2227_v53 }
 0x127   :  { %286 = vadd.xlane.f32.xlu2 %v282_v55  ;;  %v2206_v55 = vld [vmem:[%s3803_s6 + $0x30] sm:$0xf] }
 0x128   :  { %v262_v56 = vpop.xlane.xlu0 %261 }
 0x129   :  { %v275_v57 = vmul.f32 %v3013_v51, %v262_v56  ;;  %v2607_v56 = vld [vmem:[%s3803_s6 + $0x38] sm:$0xf0] }
 0x12b   :  { %v3023_v58 = vsub.f32 %v3004_v36, %v275_v57  ;;  %v2606_v57 = vld [vmem:[%s3803_s6 + $0x34] sm:$0xf] }
 0x12d   :  { %v283_v59 = vmul.f32 %v3023_v58, %v3023_v58 }
 0x12f   :  { %288 = vadd.xlane.f32.xlu2 %v283_v59  ;;  %v2207_v59 = vor.u32 %v2607_v56, %v2206_v55 }
 0x130   :  { %v264_v60 = vpop.xlane.xlu1 %263 }
 0x131   :  { %v276_v61 = vmul.f32 %v3013_v51, %v264_v60  ;;  %v2208_v60 = vld [vmem:[%s3803_s6 + $0x3c] sm:$0xf0]  ;;  %535 = vmatpush.bf16.msra.mxu2 %v2207_v59 }
 0x133   :  { %v3029_v62 = vsub.f32 %v3007_v40, %v276_v61  ;;  %v2214_v61 = vld [vmem:[%s3803_s6 + $0x38] sm:$0xf] }
 0x135   :  { %v284_v63 = vmul.f32 %v3029_v62, %v3029_v62 }
 0x137   :  { %290 = vadd.xlane.f32.xlu0 %v284_v63  ;;  %v2608_v63 = vld [vmem:[%s3803_s6 + $0x40] sm:$0xf0] }
 0x138   :  { %v266_v0 = vpop.xlane.xlu1 %265 }
 0x139   :  { %v277_v1 = vmul.f32 %v3013_v51, %v266_v0  ;;  %v2211_v0 = vor.u32 %v2606_v57, %v2208_v60 }
 0x13b   :  { %v3035_v2 = vsub.f32 %v3010_v44, %v277_v1  ;;  %v2215_v1 = vor.u32 %v2608_v63, %v2214_v61  ;;  %554 = vmatpush.bf16.msra.mxu3 %v2211_v0  ;;  %v2711_v61 = vld [vmem:[%s3802_s5] ss:$0 sm:$0xff] }
 0x13d   :  { %v285_v3 = vmul.f32 %v3035_v2, %v3035_v2  ;;  %573 = vmatpush.bf16.msrb.mxu0 %v2215_v1 }
 0x13f   :  { %292 = vadd.xlane.f32.xlu1 %v285_v3  ;;  %v2194_v3 = vld [vmem:[%s3803_s6 + $0x18] sm:$0xf]  ;;  %555 = vmatpush.bf16.msra.mxu3 %v2199_v10 }
 0x140   :  { %v2195_v6 = vor.u32 %v2604_v4, %v2194_v3 }
 0x141   :  { %574 = vmatpush.bf16.msrb.mxu0 %v2203_v11 }
 0x142   :  { %536 = vmatpush.bf16.msra.mxu2 %v2195_v6 }
 0x143   :  { %556 = vmatpush.bf16.msra.mxu3 %v2187_v22 }
 0x145   :  { %575 = vmatpush.bf16.msrb.mxu0 %v2191_v23  ;;  %v397_v23 = vperm.slane %v394_v20, 1 }
 0x146   :  { %537 = vmatpush.bf16.msra.mxu2 %v2183_v17 }
 0x19a   :  { %v287_v12 = vpop.xlane.xlu2 %286 }
 0x19b   :  { %v294_v13 = vmul.f32 %v287_v12, %v3013_v51 }
 0x19d   :  { %v298_v21 = vadd.f32 1e-06, %v294_v13 }
 0x19f   :  { %2721 = vrsqrt.f32 %v298_v21  ;;  %vm308_vm2 = vweird.f32 %v298_v21 }
 0x1a2   :  { %v289_v24 = vpop.xlane.xlu2 %288 }
 0x1a3   :  { %v295_v25 = vmul.f32 %v289_v24, %v3013_v51 }
 0x1a5   :  { %v2722_v26 = vpop.eup %2721  ;;  %v299_v27 = vadd.f32 1e-06, %v295_v25 }
 0x1a6   :  { %v303_v28 = vmul.f32 %v2722_v26, %v298_v21  ;;  %vm309_vm1 = vweird.f32 %v2722_v26  ;;  %v398_v21 = vperm.slane %v394_v20, 2 }
 0x1a7   :  { %2723 = vrsqrt.f32 %v299_v27  ;;  %vm310_vm3 = vmor %vm308_vm2, %vm309_vm1  ;;  %vm318_vm5 = vweird.f32 %v299_v27 }
 0x1a8   :  { %v304_v29 = vmul.f32 %v2722_v26, %v303_v28  ;;  %v396_v28 = vperm.slane %v394_v20, 0 }
 0x1aa   :  { %v305_v30 = vmul.f32 0.5, %v304_v29  ;;  %v291_v31 = vpop.xlane.xlu0 %290 }
 0x1ab   :  { %v296_v33 = vmul.f32 %v291_v31, %v3013_v51 }
 0x1ac   :  { %v306_v34 = vsub.f32 1.5, %v305_v30 }
 0x1ad   :  { %v2724_v35 = vpop.eup %2723  ;;  %v300_v37 = vadd.f32 1e-06, %v296_v33 }
 0x1ae   :  { %v307_v38 = vmul.f32 %v2722_v26, %v306_v34  ;;  %v313_v39 = vmul.f32 %v2724_v35, %v299_v27  ;;  %vm319_vm4 = vweird.f32 %v2724_v35 }
 0x1af   :  { %2725 = vrsqrt.f32 %v300_v37  ;;  %vm320_vm6 = vmor %vm318_vm5, %vm319_vm4  ;;  %vm328_vm8 = vweird.f32 %v300_v37 }
 0x1b0   :  { %v314_v41 = vmul.f32 %v2724_v35, %v313_v39  ;;  %v311_v42 = vsel %vm310_vm3, %v2722_v26, %v307_v38 }
 0x1b1   :  { %v342_v49 = vmul.f32 %v311_v42, %v3017_v54 }
 0x1b2   :  { %v315_v43 = vmul.f32 0.5, %v314_v41  ;;  %v293_v45 = vpop.xlane.xlu1 %292 }
 0x1b3   :  { %v297_v46 = vmul.f32 %v293_v45, %v3013_v51  ;;  %v349_v60 = vmul.f32 %v2710_v52, %v342_v49 }
 0x1b4   :  { %v316_v47 = vsub.f32 1.5, %v315_v43 }
 0x1b5   :  { %v2726_v48 = vpop.eup %2725  ;;  %v301_v50 = vadd.f32 1e-06, %v297_v46  ;;  %v356_v3 = vadd.f32 %v2711_v61, %v349_v60 }
 0x1b6   :  { %v317_v53 = vmul.f32 %v2724_v35, %v316_v47  ;;  %v323_v55 = vmul.f32 %v2726_v48, %v300_v37  ;;  %vm329_vm7 = vweird.f32 %v2726_v48 }
 0x1b7   :  { %2727 = vrsqrt.f32 %v301_v50  ;;  %vm330_vm9 = vmor %vm328_vm8, %vm329_vm7  ;;  %vm338_vm11 = vweird.f32 %v301_v50 }
 0x1b8   :  { %v321_v56 = vsel %vm320_vm6, %v2724_v35, %v317_v53  ;;  %v324_v57 = vmul.f32 %v2726_v48, %v323_v55 }
 0x1b9   :  { %v343_v59 = vmul.f32 %v321_v56, %v3023_v58 }
 0x1ba   :  { %v325_v54 = vmul.f32 0.5, %v324_v57 }
 0x1bb   :  { %v350_v63 = vmul.f32 %v2710_v52, %v343_v59 }
 0x1bc   :  { %v326_v0 = vsub.f32 1.5, %v325_v54 }
 0x1bd   :  { %v2728_v1 = vpop.eup %2727  ;;  %v357_v4 = vadd.f32 %v2711_v61, %v350_v63 }
 0x1be   :  { %v327_v5 = vmul.f32 %v2726_v48, %v326_v0  ;;  %v333_v6 = vmul.f32 %v2728_v1, %v301_v50  ;;  %vm339_vm10 = vweird.f32 %v2728_v1 }
 0x1bf   :  { %v360_v7 = vpack.c.bf16 %v357_v4, %v356_v3  ;;  %vm340_vm12 = vmor %vm338_vm11, %vm339_vm10 }
 0x1c0   :  { %v334_v8 = vmul.f32 %v2728_v1, %v333_v6  ;;  %v331_v58 = vsel %vm330_vm9, %v2726_v48, %v327_v5 }
 0x1c1   :  { %538 = vmatmul.bf16.vlgmr.msra.gmra.mxu2 %v360_v7  ;;  %557 = vmatmul.bf16.vlgmr.msra.gmra.mxu3 %v360_v7  ;;  %v344_v11 = vmul.f32 %v331_v58, %v3029_v62 }
 0x1c2   :  { %v335_v9 = vmul.f32 0.5, %v334_v8  ;;  %576 = vmatmul.bf16.vlgmr.msrb.gmra.mxu0 %v360_v7 }
 0x1c3   :  { %v351_v15 = vmul.f32 %v2710_v52, %v344_v11 }
 0x1c4   :  { %v336_v10 = vsub.f32 1.5, %v335_v9  ;;  %v3242_v9 = vld [vmem:[%s3800_s3] ss:$0 sm:$0xff]  ;;  %s2828_s3 = smov 64  }
 0x1c5   :  { %v358_v17 = vadd.f32 %v2711_v61, %v351_v15 }
 0x1c6   :  { %v337_v12 = vmul.f32 %v2728_v1, %v336_v10 }
 0x1c8   :  { %v341_v13 = vsel %vm340_vm12, %v2728_v1, %v337_v12 }
 0x1c9   :  { %v345_v14 = vmul.f32 %v341_v13, %v3035_v2 }
 0x1cb   :  { %v352_v16 = vmul.f32 %v2710_v52, %v345_v14 }
 0x1cd   :  { %v359_v18 = vadd.f32 %v2711_v61, %v352_v16 }
 0x1cf   :  { %v361_v19 = vpack.c.bf16 %v359_v18, %v358_v17 }
 0x1d1   :  { %543 = vmatmul.bf16.gmra.mxu2 %v361_v19  ;;  %562 = vmatmul.bf16.gmra.mxu3 %v361_v19 }
 0x1d2   :  { %581 = vmatmul.bf16.gmra.mxu0 %v361_v19 }
 0x23f   :  { %v577_v62 = vpop.f32.mrf.mxu0 }
 0x240   :  { %v578_v22 = vadd.f32 %v577_v62, %v398_v21 }
 0x242   :  { %v3200_v24 = vpack.c.bf16 %v578_v22, %v578_v22 }
 0x244   :  { %v539_v2 = vpop.f32.mrf.mxu2  ;;  %v558_v25 = vpop.f32.mrf.mxu3  ;;  %v741_v26 = vsel %vm739_vm13, %v3200_v24, 0 }
 0x245   :  { %v559_v27 = vadd.f32 %v558_v25, %v397_v23  ;;  %750 = vmatpush.bf16.msrb.mxu2 %v741_v26  ;;  %v540_v33 = vadd.f32 %v539_v2, %v396_v28 }
 0x247   :  { %v3204_v29 = vpack.c.bf16 %v559_v27, %v559_v27  ;;  %v579_v30 = vpop.f32.mrf.mxu0  ;;  %v3208_v38 = vpack.c.bf16 %v540_v33, %v540_v33 }
 0x248   :  { %v580_v45 = vadd.f32 %v579_v30, %v398_v21 }
 0x249   :  { %v604_v31 = vsel %vm599_vm14, %v3204_v29, 0  ;;  %v819_v30 = vunpack.c.l.b16 %v3204_v29 }
 0x24a   :  { %613 = vmatpush.bf16.xpose.msrb.mxu1 %v604_v31  ;;  %v3220_v52 = vpack.c.bf16 %v580_v45, %v580_v45 }
 0x24b   :  { %v820_v31 = vpack.c.b16 %v819_v30, %v819_v30 }
 0x24c   :  { %v541_v34 = vpop.f32.mrf.mxu2  ;;  %v560_v35 = vpop.f32.mrf.mxu3  ;;  %v760_v60 = vsel %vm739_vm13, %v3220_v52, 0 }
 0x24d   :  { %v561_v37 = vadd.f32 %v560_v35, %v397_v23  ;;  %v542_v47 = vadd.f32 %v541_v34, %v396_v28 }
 0x24f   :  { %v3210_v39 = vpack.c.bf16 %v561_v37, %v561_v37  ;;  %v582_v41 = vpop.f32.mrf.mxu0  ;;  %v588_v55 = vpack.c.bf16 %v542_v47, %v542_v47 }
 0x250   :  { %v583_v42 = vadd.f32 %v582_v41, %v398_v21 }
 0x251   :  { %2276 = vmatmul.msk.bf16.vlgmr.msrb.gmra.mxu1 %vm599_vm14, %v3208_v38  ;;  %v623_v43 = vsel %vm599_vm14, %v3210_v39, 0  ;;  %v843_v33 = vunpack.c.l.b16 %v588_v55 }
 0x252   :  { %v3216_v46 = vpack.c.bf16 %v583_v42, %v583_v42  ;;  %632 = vmatpush.bf16.xpose.msrb.mxu3 %v623_v43 }
 0x253   :  { %v844_v34 = vpack.c.b16 %v843_v33, %v843_v33 }
 0x254   :  { %v779_v48 = vsel %vm739_vm13, %v3216_v46, 0  ;;  %v563_v49 = vpop.f32.mrf.mxu3  ;;  %v544_v53 = vpop.f32.mrf.mxu2 }
 0x255   :  { %v564_v50 = vadd.f32 %v563_v49, %v397_v23  ;;  %788 = vmatpush.bf16.msra.mxu0 %v779_v48  ;;  %v545_v6 = vadd.f32 %v544_v53, %v396_v28 }
 0x257   :  { %v3222_v56 = vpack.c.bf16 %v564_v50, %v564_v50  ;;  %v584_v57 = vpop.f32.mrf.mxu0  ;;  %v3234_v8 = vpack.c.bf16 %v545_v6, %v545_v6 }
 0x258   :  { %v585_v61 = vadd.f32 %v584_v57, %v398_v21 }
 0x259   :  { %v642_v59 = vsel %vm599_vm14, %v3222_v56, 0  ;;  %2277 = vmatmul.msk.bf16.vlgmr.msrb.gmra.mxu3 %vm599_vm14, %v588_v55 }
 0x25a   :  { %651 = vmatpush.bf16.xpose.msra.mxu3 %v642_v59  ;;  %v3229_v0 = vpack.c.bf16 %v585_v61, %v585_v61  ;;  %v848_v61 = vunpack.c.l.b16 %v3210_v39 }
 0x25c   :  { %v565_v54 = vpop.f32.mrf.mxu3  ;;  %v546_v3 = vpop.f32.mrf.mxu2  ;;  %v798_v5 = vsel %vm739_vm13, %v3229_v0, 0 }
 0x25d   :  { %v566_v63 = vadd.f32 %v565_v54, %v397_v23  ;;  %v547_v7 = vadd.f32 %v546_v3, %v396_v28 }
 0x25f   :  { %v594_v1 = vpack.c.bf16 %v566_v63, %v566_v63  ;;  %v590_v58 = vpack.c.bf16 %v547_v7, %v547_v7 }
 0x261   :  { %v661_v4 = vsel %vm599_vm14, %v594_v1, 0  ;;  %v906_v35 = vunpack.c.l.b16 %v594_v1  ;;  %v901_v41 = vunpack.c.l.b16 %v590_v58  ;;  %v849_v1 = vpack.c.b16 %v848_v61, %v848_v61 }
 0x262   :  { %769 = vmatpush.bf16.msrb.mxu3 %v760_v60  ;;  %670 = vmatpush.bf16.xpose.msra.mxu1 %v661_v4 }
 0x263   :  { %v907_v37 = vpack.c.b16 %v906_v35, %v906_v35  ;;  %v902_v42 = vpack.c.b16 %v901_v41, %v901_v41 }
 0x269   :  { %2278 = vmatmul.msk.bf16.vlgmr.msra.gmra.mxu3 %vm599_vm14, %v3234_v8  ;;  %2279 = vmatmul.msk.bf16.vlgmr.msra.gmra.mxu1 %vm599_vm14, %v590_v58  ;;  %v877_v58 = vunpack.c.l.b16 %v3222_v56  ;;  %v814_v56 = vunpack.c.l.b16 %v3208_v38 }
 0x26a   :  { %807 = vmatpush.bf16.msrb.mxu1 %v798_v5 }
 0x26b   :  { %v878_v39 = vpack.c.b16 %v877_v58, %v877_v58 }
 0x2ce   :  { %v615_v10 = vpop.f32.mrf.mxu1 }
 0x2cf   :  { %v676_v11 = vmul.f32 0.125, %v615_v10 }
 0x2d1   :  { %v683_v12 = vadd.f32 %v3242_v9, %v676_v11 }
 0x2d3   :  { %v688_v13 = vsel %vm687_vm15, %v683_v12, -inf }
 0x2d4   :  { %689 = vmax.xlane.f32.xlu2 %v688_v13  ;;  %v872_v13 = vunpack.c.l.b16 %v3234_v8 }
 0x2d6   :  { %v617_v14 = vpop.f32.mrf.mxu1 }
 0x2dc   :  { %v634_v15 = vpop.f32.mrf.mxu3 }
 0x2dd   :  { %v677_v16 = vmul.f32 0.125, %v634_v15  ;;  %v873_v15 = vpack.c.b16 %v872_v13, %v872_v13 }
 0x2df   :  { %v684_v17 = vadd.f32 %v3242_v9, %v677_v16 }
 0x2e1   :  { %v691_v18 = vsel %vm687_vm15, %v684_v17, -inf }
 0x2e2   :  { %692 = vmax.xlane.f32.xlu0 %v691_v18  ;;  %v815_v18 = vpack.c.b16 %v814_v56, %v814_v56 }
 0x2e4   :  { %v636_v19 = vpop.f32.mrf.mxu3 }
 0x2e6   :  { %v672_v20 = vpop.f32.mrf.mxu1 }
 0x2e7   :  { %v679_v21 = vmul.f32 0.125, %v672_v20 }
 0x2e9   :  { %v686_v62 = vadd.f32 %v3242_v9, %v679_v21 }
 0x2eb   :  { %v697_v22 = vsel %vm687_vm15, %v686_v62, -inf }
 0x2ec   :  { %698 = vmax.xlane.f32.xlu2 %v697_v22  ;;  %v653_v23 = vpop.f32.mrf.mxu3 }
 0x2ed   :  { %v678_v2 = vmul.f32 0.125, %v653_v23 }
 0x2ee   :  { %v674_v25 = vpop.f32.mrf.mxu1 }
 0x2ef   :  { %v685_v26 = vadd.f32 %v3242_v9, %v678_v2 }
 0x2f1   :  { %v694_v27 = vsel %vm687_vm15, %v685_v26, -inf }
 0x2f2   :  { %695 = vmax.xlane.f32.xlu1 %v694_v27 }
 0x2f4   :  { %v655_v28 = vpop.f32.mrf.mxu3 }
 0x304   :  { %821 = vrot.lane.b32.xlu2 %v820_v31, %s2828_s3 }
 0x30c   :  { %845 = vrot.lane.b32.xlu2 %v844_v34, %s2828_s3 }
 0x314   :  { %908 = vrot.lane.b32.xlu2 %v907_v37, %s2828_s3 }
 0x31c   :  { %903 = vrot.lane.b32.xlu2 %v902_v42, %s2828_s3 }
 0x347   :  { %v690_v43 = vpop.xlane.xlu2 %689 }
 0x348   :  { %v700_v45 = vsub.f32 %v683_v12, %v690_v43 }
 0x34a   :  { %v704_v47 = vmul.f32 1.442695, %v700_v45 }
 0x34c   :  { %2729 = vpow2.f32 %v704_v47 }
 0x352   :  { %v2730_v29 = vpop.eup %2729 }
 0x353   :  { %v712_v48 = vsel %vm687_vm15, %v2730_v29, 0.0 }
 0x354   :  { %713 = vadd.xlane.f32.xlu0 %v712_v48 }
 0x355   :  { %v693_v49 = vpop.xlane.xlu0 %692 }
 0x356   :  { %v701_v50 = vsub.f32 %v684_v17, %v693_v49 }
 0x358   :  { %v706_v53 = vmul.f32 1.442695, %v701_v50 }
 0x35a   :  { %2731 = vpow2.f32 %v706_v53 }
 0x35f   :  { %v699_v55 = vpop.xlane.xlu2 %698 }
 0x360   :  { %v2732_v57 = vpop.eup %2731  ;;  %v703_v59 = vsub.f32 %v686_v62, %v699_v55 }
 0x361   :  { %v715_v60 = vsel %vm687_vm15, %v2732_v57, 0.0 }
 0x362   :  { %v710_v54 = vmul.f32 1.442695, %v703_v59  ;;  %716 = vadd.xlane.f32.xlu1 %v715_v60 }
 0x364   :  { %2733 = vpow2.f32 %v710_v54 }
 0x365   :  { %v696_v63 = vpop.xlane.xlu1 %695 }
 0x366   :  { %v702_v3 = vsub.f32 %v685_v26, %v696_v63 }
 0x367   :  { %v822_v4 = vpop.permute.xlu2 %821 }
 0x368   :  { %v708_v5 = vmul.f32 1.442695, %v702_v3  ;;  %v827_v6 = vsel %vm599_vm14, %v822_v4, 0  ;;  %850 = vrot.lane.b32.xlu0 %v849_v1, %s2828_s3 }
 0x369   :  { %836 = vmatpush.bf16.xpose.msra.mxu2 %v827_v6 }
 0x36a   :  { %v2734_v7 = vpop.eup %2733  ;;  %2735 = vpow2.f32 %v708_v5 }
 0x36b   :  { %v721_v10 = vsel %vm687_vm15, %v2734_v7, 0.0 }
 0x36c   :  { %722 = vadd.xlane.f32.xlu1 %v721_v10 }
 0x36f   :  { %v846_v11 = vpop.permute.xlu2 %845 }
 0x370   :  { %v2736_v12 = vpop.eup %2735  ;;  %879 = vrot.lane.b32.xlu0 %v878_v39, %s2828_s3 }
 0x371   :  { %v718_v14 = vsel %vm687_vm15, %v2736_v12, 0.0 }
 0x374   :  { %719 = vadd.xlane.f32.xlu1 %v718_v14 }
 0x377   :  { %v909_v16 = vpop.permute.xlu2 %908 }
 0x378   :  { %v914_v17 = vsel %vm599_vm14, %v909_v16, 0  ;;  %874 = vrot.lane.b32.xlu0 %v873_v15, %s2828_s3 }
 0x379   :  { %923 = vmatpush.bf16.xpose.msra.mxu1 %v914_v17  ;;  %v986_v17 = vunpack.c.l.b16 %v3200_v24 }
 0x37b   :  { %v987_v56 = vpack.c.b16 %v986_v17, %v986_v17  ;;  %v2631_v17 = vld [vmem:[%s3805_s8 + $0x38] sm:$0xff] }
 0x37f   :  { %v904_v42 = vpop.permute.xlu2 %903 }
 0x38d   :  { %816 = vrot.lane.b32.xlu1 %v815_v18, %s2828_s3  ;;  %v1034_v18 = vunpack.c.l.b16 %v3216_v46 }
 0x3c7   :  { %v714_v19 = vpop.xlane.xlu0 %713 }
 0x3c8   :  { %2737 = vrcp.f32 %v714_v19  ;;  %v1035_v19 = vpack.c.b16 %v1034_v18, %v1034_v18 }
 0x3ce   :  { %v2738_v20 = vpop.eup %2737 }
 0x3cf   :  { %v728_v21 = vmul.f32 %v2738_v20, %v2730_v29 }
 0x3d1   :  { %v732_v8 = vpack.c.bf16 %v728_v21, %v728_v21 }
 0x3d3   :  { %2280 = vmatmul.msk.bf16.vlgmr.msrb.gmra.mxu2 %vm687_vm15, %v732_v8 }
 0x3d5   :  { %v717_v62 = vpop.xlane.xlu1 %716 }
 0x3d6   :  { %2739 = vrcp.f32 %v717_v62 }
 0x3da   :  { %v851_v22 = vpop.permute.xlu0 %850 }
 0x3db   :  { %v856_v23 = vsel %vm599_vm14, %v851_v22, 0 }
 0x3dc   :  { %v2740_v2 = vpop.eup %2739  ;;  %865 = vmatpush.bf16.xpose.msra.mxu3 %v856_v23 }
 0x3dd   :  { %v729_v25 = vmul.f32 %v2740_v2, %v2732_v57 }
 0x3df   :  { %v733_v26 = vpack.c.bf16 %v729_v25, %v729_v25  ;;  %v723_v38 = vpop.xlane.xlu1 %722 }
 0x3e0   :  { %2741 = vrcp.f32 %v723_v38 }
 0x3e1   :  { %2281 = vmatmul.msk.bf16.vlgmr.msrb.gmra.mxu3 %vm687_vm15, %v733_v26 }
 0x3e2   :  { %v880_v27 = vpop.permute.xlu0 %879 }
 0x3e3   :  { %v885_v28 = vsel %vm599_vm14, %v880_v27, 0 }
 0x3e4   :  { %894 = vmatpush.bf16.xpose.msrb.mxu0 %v885_v28 }
 0x3e6   :  { %v2742_v30 = vpop.eup %2741 }
 0x3e7   :  { %v731_v31 = vmul.f32 %v2742_v30, %v2734_v7  ;;  %v720_v33 = vpop.xlane.xlu1 %719 }
 0x3e8   :  { %2743 = vrcp.f32 %v720_v33 }
 0x3e9   :  { %v735_v34 = vpack.c.bf16 %v731_v31, %v731_v31 }
 0x3ea   :  { %v875_v45 = vpop.permute.xlu0 %874 }
 0x3eb   :  { %2283 = vmatmul.msk.bf16.vlgmr.msrb.gmra.mxu1 %vm687_vm15, %v735_v34 }
 0x3ee   :  { %v2744_v35 = vpop.eup %2743 }
 0x3ef   :  { %v730_v37 = vmul.f32 %v2744_v35, %v2736_v12 }
 0x3f1   :  { %v734_v41 = vpack.c.bf16 %v730_v37, %v730_v37  ;;  %2285 = vmatmul.msk.bf16.vlgmr.msra.gmra.mxu3 %vm599_vm14, %v846_v11 }
 0x3f3   :  { %2282 = vmatmul.msk.bf16.vlgmr.msra.gmra.mxu0 %vm687_vm15, %v734_v41 }
 0x3fb   :  { %2287 = vmatmul.msk.bf16.vlgmr.msra.gmra.mxu1 %vm599_vm14, %v904_v42  ;;  %v1010_v42 = vunpack.c.l.b16 %v3220_v52 }
 0x3ff   :  { %v817_v43 = vpop.permute.xlu1 %816 }
 0x400   :  { %2284 = vmatmul.msk.bf16.vlgmr.msra.gmra.mxu2 %vm599_vm14, %v817_v43  ;;  %v1011_v43 = vpack.c.b16 %v1010_v42, %v1010_v42 }
 0x403   :  { %2286 = vmatmul.msk.bf16.vlgmr.msrb.gmra.mxu0 %vm599_vm14, %v875_v45 }
 0x456   :  { %v3281_v47 = vpop.f32.mrf.mxu2 }
 0x45e   :  { %v754_v29 = vpop.f32.mrf.mxu2 }
 0x464   :  { %v3283_v48 = vpop.f32.mrf.mxu3 }
 0x468   :  { %v3285_v49 = vpop.f32.mrf.mxu1 }
 0x46c   :  { %v773_v50 = vpop.f32.mrf.mxu3 }
 0x46d   :  { %v1058_v50 = vunpack.c.l.b16 %v3229_v0 }
 0x470   :  { %v3287_v53 = vpop.f32.mrf.mxu0  ;;  %v811_v55 = vpop.f32.mrf.mxu1 }
 0x471   :  { %v1059_v55 = vpack.c.b16 %v1058_v50, %v1058_v50 }
 0x474   :  { %v867_v57 = vpop.f32.mrf.mxu3 }
 0x475   :  { %v930_v59 = vmul.f32 0.125, %v867_v57 }
 0x477   :  { %v934_v60 = vadd.f32 %v3242_v9, %v930_v59 }
 0x478   :  { %v792_v61 = vpop.f32.mrf.mxu0  ;;  %v925_v54 = vpop.f32.mrf.mxu1 }
 0x479   :  { %v940_v63 = vsel %vm687_vm15, %v934_v60, -inf  ;;  %v932_v11 = vmul.f32 0.125, %v925_v54 }
 0x47a   :  { %941 = vmax.xlane.f32.xlu2 %v940_v63 }
 0x47b   :  { %v936_v15 = vadd.f32 %v3242_v9, %v932_v11 }
 0x47c   :  { %v869_v1 = vpop.f32.mrf.mxu3 }
 0x47d   :  { %v946_v16 = vsel %vm687_vm15, %v936_v15, -inf }
 0x480   :  { %v896_v3 = vpop.f32.mrf.mxu0  ;;  %v927_v4 = vpop.f32.mrf.mxu1 }
 0x481   :  { %v931_v5 = vmul.f32 0.125, %v896_v3 }
 0x483   :  { %v838_v6 = vpop.f32.mrf.mxu2  ;;  %v935_v7 = vadd.f32 %v3242_v9, %v931_v5 }
 0x484   :  { %v929_v58 = vmul.f32 0.125, %v838_v6 }
 0x485   :  { %v943_v10 = vsel %vm687_vm15, %v935_v7, -inf }
 0x486   :  { %944 = vmax.xlane.f32.xlu1 %v943_v10  ;;  %v933_v39 = vadd.f32 %v3242_v9, %v929_v58 }
 0x488   :  { %v898_v12 = vpop.f32.mrf.mxu0  ;;  %v937_v13 = vsel %vm687_vm15, %v933_v39, -inf }
 0x489   :  { %938 = vmax.xlane.f32.xlu0 %v937_v13 }
 0x48b   :  { %v840_v14 = vpop.f32.mrf.mxu2 }
 0x491   :  { %947 = vmax.xlane.f32.xlu0 %v946_v16 }
 0x4a5   :  { %988 = vrot.lane.b32.xlu0 %v987_v56, %s2828_s3  ;;  %v2630_v56 = vld [vmem:[%s3805_s8 + $0x30] sm:$0xff] }
 0x4ad   :  { %1036 = vrot.lane.b32.xlu0 %v1035_v19, %s2828_s3 }
 0x4ed   :  { %v942_v20 = vpop.xlane.xlu2 %941 }
 0x4ee   :  { %v950_v21 = vsub.f32 %v934_v60, %v942_v20  ;;  %v2629_v20 = vld [vmem:[%s3805_s8 + $0x28] sm:$0xff] }
 0x4f0   :  { %v955_v8 = vmul.f32 1.442695, %v950_v21 }
 0x4f2   :  { %2745 = vpow2.f32 %v955_v8  ;;  %v2628_v8 = vld [vmem:[%s3805_s8 + $0x20] sm:$0xff] }
 0x4f8   :  { %v2746_v62 = vpop.eup %2745 }
 0x4f9   :  { %v964_v9 = vsel %vm687_vm15, %v2746_v62, 0.0  ;;  %v945_v24 = vpop.xlane.xlu1 %944 }
 0x4fa   :  { %965 = vadd.xlane.f32.xlu1 %v964_v9  ;;  %v951_v46 = vsub.f32 %v935_v7, %v945_v24 }
 0x4fc   :  { %v939_v22 = vpop.xlane.xlu0 %938  ;;  %v957_v30 = vmul.f32 1.442695, %v951_v46 }
 0x4fd   :  { %v949_v23 = vsub.f32 %v933_v39, %v939_v22  ;;  %v2626_v22 = vld [vmem:[%s3805_s8 + $0x10] sm:$0xff] }
 0x4ff   :  { %v953_v2 = vmul.f32 1.442695, %v949_v23  ;;  %v2625_v23 = vld [vmem:[%s3805_s8 + $0x8] sm:$0xff] }
 0x501   :  { %2747 = vpow2.f32 %v953_v2 }
 0x504   :  { %v948_v25 = vpop.xlane.xlu0 %947 }
 0x505   :  { %v952_v26 = vsub.f32 %v936_v15, %v948_v25 }
 0x507   :  { %v2748_v38 = vpop.eup %2747  ;;  %v959_v27 = vmul.f32 1.442695, %v952_v26  ;;  %v2624_v26 = vld [vmem:[%s3805_s8] sm:$0xff] }
 0x508   :  { %v961_v28 = vsel %vm687_vm15, %v2748_v38, 0.0 }
 0x509   :  { %2749 = vpow2.f32 %v959_v27  ;;  %962 = vadd.xlane.f32.xlu2 %v961_v28 }
 0x50a   :  { %2751 = vpow2.f32 %v957_v30 }
 0x50f   :  { %v2750_v31 = vpop.eup %2749 }
 0x510   :  { %v970_v33 = vsel %vm687_vm15, %v2750_v31, 0.0  ;;  %v2752_v34 = vpop.eup %2751 }
 0x511   :  { %971 = vadd.xlane.f32.xlu1 %v970_v33  ;;  %v967_v41 = vsel %vm687_vm15, %v2752_v34, 0.0 }
 0x517   :  { %v989_v35 = vpop.permute.xlu0 %988 }
 0x518   :  { %v994_v37 = vsel %vm739_vm13, %v989_v35, 0 }
 0x519   :  { %1003 = vmatpush.bf16.msrb.mxu2 %v994_v37  ;;  %968 = vadd.xlane.f32.xlu1 %v967_v41 }
 0x51d   :  { %1171 = vmatpush.bf16.msra.mxu2 %v2631_v17  ;;  %v2660_v17 = vld [vmem:[%s3810_s13 + $0xe4] sm:$0xf] }
 0x51f   :  { %v1037_v45 = vpop.permute.xlu0 %1036 }
 0x520   :  { %v1042_v29 = vsel %vm739_vm13, %v1037_v45, 0 }
 0x521   :  { %1051 = vmatpush.bf16.msra.mxu0 %v1042_v29  ;;  %1012 = vrot.lane.b32.xlu2 %v1011_v43, %s2828_s3 }
 0x522   :  { %1172 = vmatpush.bf16.msra.mxu2 %v2630_v56 }
 0x526   :  { %1173 = vmatpush.bf16.msra.mxu2 %v2629_v20  ;;  %v2663_v20 = vld [vmem:[%s3810_s13 + $0xf4] sm:$0xf0] }
 0x52a   :  { %1174 = vmatpush.bf16.msra.mxu2 %v2628_v8 }
 0x532   :  { %1060 = vrot.lane.b32.xlu1 %v1059_v55, %s2828_s3 }
 0x56d   :  { %v966_v57 = vpop.xlane.xlu1 %965 }
 0x56e   :  { %2753 = vrcp.f32 %v966_v57 }
 0x574   :  { %v2754_v60 = vpop.eup %2753 }
 0x575   :  { %v978_v54 = vmul.f32 %v2754_v60, %v2746_v62  ;;  %v2627_v62 = vld [vmem:[%s3805_s8 + $0x18] sm:$0xff] }
 0x576   :  { %1175 = vmatpush.bf16.msra.mxu2 %v2627_v62  ;;  %v2661_v62 = vld [vmem:[%s3810_s13 + $0xec] sm:$0xf] }
 0x577   :  { %v982_v5 = vpack.c.bf16 %v978_v54, %v978_v54 }
 0x57a   :  { %1176 = vmatpush.bf16.msra.mxu2 %v2626_v22 }
 0x57c   :  { %v963_v59 = vpop.xlane.xlu2 %962 }
 0x57d   :  { %2755 = vrcp.f32 %v963_v59 }
 0x57e   :  { %1177 = vmatpush.bf16.msra.mxu2 %v2625_v23  ;;  %v2422_v23 = vld [vmem:[%s3810_s13 + $0xc0] sm:$0xf] }
 0x582   :  { %1178 = vmatpush.bf16.msra.mxu2 %v2624_v26  ;;  %v2424_v26 = vld [vmem:[%s3810_s13 + $0xd0] sm:$0xf0] }
 0x583   :  { %v2756_v61 = vpop.eup %2755 }
 0x584   :  { %v977_v52 = vmul.f32 %v2756_v61, %v2748_v38  ;;  %v972_v63 = vpop.xlane.xlu1 %971  ;;  %v1013_v1 = vpop.permute.xlu2 %1012 }
 0x585   :  { %v1018_v3 = vsel %vm739_vm13, %v1013_v1, 0 }
 0x586   :  { %v981_v4 = vpack.c.bf16 %v977_v52, %v977_v52  ;;  %1027 = vmatpush.bf16.msrb.mxu3 %v1018_v3 }
 0x588   :  { %2288 = vmatmul.msk.bf16.vlgmr.msrb.gmra.mxu2 %vm687_vm15, %v981_v4 }
 0x589   :  { %2289 = vmatmul.msk.bf16.vlgmr.msrb.gmra.mxu3 %vm687_vm15, %v982_v5 }
 0x58c   :  { %v969_v0 = vpop.xlane.xlu1 %968 }
 0x58d   :  { %2757 = vrcp.f32 %v969_v0 }
 0x58e   :  { %2759 = vrcp.f32 %v972_v63 }
 0x593   :  { %v2758_v6 = vpop.eup %2757 }
 0x594   :  { %v979_v7 = vmul.f32 %v2758_v6, %v2752_v34  ;;  %v2760_v10 = vpop.eup %2759 }
 0x595   :  { %v980_v39 = vmul.f32 %v2760_v10, %v2750_v31 }
 0x596   :  { %v983_v58 = vpack.c.bf16 %v979_v7, %v979_v7 }
 0x597   :  { %v984_v13 = vpack.c.bf16 %v980_v39, %v980_v39 }
 0x598   :  { %2290 = vmatmul.msk.bf16.vlgmr.msra.gmra.mxu0 %vm687_vm15, %v983_v58 }
 0x5a4   :  { %v1061_v11 = vpop.permute.xlu1 %1060 }
 0x5a5   :  { %v1066_v12 = vsel %vm739_vm13, %v1061_v11, 0 }
 0x5a6   :  { %1075 = vmatpush.bf16.msrb.mxu1 %v1066_v12 }
 0x5a9   :  { %2291 = vmatmul.msk.bf16.vlgmr.msrb.gmra.mxu1 %vm687_vm15, %v984_v13 }
 0x60b   :  { %v1005_v14 = vpop.f32.mrf.mxu2 }
 0x60c   :  { %v1029_v15 = vpop.f32.mrf.mxu3 }
 0x60d   :  { %v2700_v16 = vpack.i.bf16 %v1029_v15, %v1005_v14  ;;  %v2438_v15 = vld [vmem:[%s3810_s13 + $0xe0] sm:$0xf] }
 0x60f   :  { %2701 = vrot.lane.b32.xlu2 %v2700_v16, %s2828_s3  ;;  %v2662_v16 = vld [vmem:[%s3810_s13 + $0xec] sm:$0xf0] }
 0x610   :  { %v2439_v56 = vor.u32 %v2662_v16, %v2438_v15 }
 0x612   :  { %1502 = vmatpush.bf16.msra.mxu3 %v2439_v56  ;;  %v2384_v56 = vld [vmem:[%s3810_s13 + $0x78] sm:$0xf0] }
 0x613   :  { %v1007_v18 = vpop.f32.mrf.mxu2 }
 0x614   :  { %v1031_v19 = vpop.f32.mrf.mxu3  ;;  %v2440_v18 = vld [vmem:[%s3810_s13 + $0xf0] sm:$0xf0] }
 0x615   :  { %v1053_v21 = vpop.f32.mrf.mxu0  ;;  %v2446_v19 = vld [vmem:[%s3810_s13 + $0xe8] sm:$0xf] }
 0x616   :  { %v2447_v8 = vor.u32 %v2663_v20, %v2446_v19  ;;  %v2358_v19 = vld [vmem:[%s3810_s13 + $0x40] sm:$0xf]  ;;  %v2642_v20 = vld [vmem:[%s3810_s13 + $0x4c] sm:$0xf0] }
 0x618   :  { %1540 = vmatpush.bf16.msra.mxu1 %v2447_v8  ;;  %v2359_v8 = vor.u32 %v2642_v20, %v2358_v19  ;;  %v2715_v19 = vld [vmem:[%s3808_s11] ss:$0 sm:$0xff] }
 0x61d   :  { %v1055_v9 = vpop.f32.mrf.mxu0 }
 0x61e   :  { %v2448_v9 = vld [vmem:[%s3810_s13 + $0xf8] sm:$0xf0] }
 0x61f   :  { %v2451_v22 = vor.u32 %v2661_v62, %v2448_v9  ;;  %v2360_v62 = vld [vmem:[%s3810_s13 + $0x50] sm:$0xf0]  ;;  %v2366_v9 = vld [vmem:[%s3810_s13 + $0x48] sm:$0xf] }
 0x621   :  { %1559 = vmatpush.bf16.msrb.mxu2 %v2451_v22  ;;  %v2643_v22 = vld [vmem:[%s3810_s13 + $0x54] sm:$0xf0] }
 0x626   :  { %v1077_v2 = vpop.f32.mrf.mxu1 }
 0x627   :  { %v2705_v24 = vpack.i.bf16 %v1077_v2, %v1053_v21  ;;  %v2443_v21 = vor.u32 %v2660_v17, %v2440_v18  ;;  %v2658_v2 = vld [vmem:[%s3810_s13 + $0xcc] sm:$0xf0]  ;;  %v2645_v17 = vld [vmem:[%s3810_s13 + $0x6c] sm:$0xf] }
 0x628   :  { %v2387_v18 = vor.u32 %v2645_v17, %v2384_v56 }
 0x629   :  { %2706 = vrot.lane.b32.xlu0 %v2705_v24, %s2828_s3  ;;  %1521 = vmatpush.bf16.msrb.mxu0 %v2443_v21  ;;  %v2656_v24 = vld [vmem:[%s3810_s13 + $0xc4] sm:$0xf] }
 0x62a   :  { %v2640_v21 = vld [vmem:[%s3810_s13 + $0x44] sm:$0xf] }
 0x62e   :  { %v1079_v25 = vpop.f32.mrf.mxu1 }
 0x62f   :  { %v2423_v25 = vor.u32 %v2658_v2, %v2422_v23  ;;  %v2363_v23 = vor.u32 %v2640_v21, %v2360_v62  ;;  %v2367_v2 = vor.u32 %v2643_v22, %v2366_v9  ;;  %v2716_v9 = vld [vmem:[%s3809_s12] ss:$0 sm:$0xff] }
 0x631   :  { %1503 = vmatpush.bf16.msra.mxu3 %v2423_v25  ;;  %v2368_v25 = vld [vmem:[%s3810_s13 + $0x58] sm:$0xf0] }
 0x669   :  { %v2702_v38 = vpop.permute.xlu2 %2701 }
 0x66a   :  { %v2704_v46 = vunpack.i.h.bf16 %v2702_v38  ;;  %v2703_v27 = vunpack.i.l.bf16 %v2702_v38  ;;  %v2430_v38 = vld [vmem:[%s3810_s13 + $0xc8] sm:$0xf] }
 0x66c   :  { %v1098_v28 = vsel %vm599_vm14, %v3283_v48, %v2704_v46  ;;  %v1097_v30 = vsel %vm599_vm14, %v3281_v47, %v2703_v27  ;;  %v2713_v48 = vld [vmem:[%s3806_s9] ss:$0 sm:$0xff]  ;;  %v2659_v46 = vld [vmem:[%s3810_s13 + $0xd4] sm:$0xf0]  ;;  %v2427_v27 = vor.u32 %v2656_v24, %v2424_v26  ;;  %v2641_v24 = vld [vmem:[%s3810_s13 + $0x4c] sm:$0xf] }
 0x66d   :  { %v1101_v31 = vpack.c.bf16 %v1098_v28, %v1097_v30  ;;  %v2714_v47 = vld [vmem:[%s3807_s10] ss:$0 sm:$0xff]  ;;  %v2431_v28 = vor.u32 %v2659_v46, %v2430_v38  ;;  %v2657_v30 = vld [vmem:[%s3810_s13 + $0xcc] sm:$0xf]  ;;  %v2371_v26 = vor.u32 %v2641_v24, %v2368_v25  ;;  %v2638_v46 = vld [vmem:[%s3810_s13 + $0x2c] sm:$0xf0] }
 0x66e   :  { %1522 = vmatpush.bf16.msrb.mxu0 %v2427_v27  ;;  %v2342_v38 = vld [vmem:[%s3810_s13 + $0x20] sm:$0xf]  ;;  %v2636_v27 = vld [vmem:[%s3810_s13 + $0x24] sm:$0xf] }
 0x66f   :  { %1179 = vmatmul.bf16.vlgmr.msra.gmra.mxu2 %v1101_v31  ;;  %v2432_v31 = vld [vmem:[%s3810_s13 + $0xd8] sm:$0xf0]  ;;  %1541 = vmatpush.bf16.msra.mxu1 %v2431_v28  ;;  %v2343_v28 = vor.u32 %v2638_v46, %v2342_v38 }
 0x69b   :  { %v2707_v33 = vpop.permute.xlu0 %2706 }
 0x69c   :  { %v2709_v34 = vunpack.i.h.bf16 %v2707_v33  ;;  %v2708_v35 = vunpack.i.l.bf16 %v2707_v33  ;;  %v2435_v33 = vor.u32 %v2657_v30, %v2432_v31  ;;  %v2344_v30 = vld [vmem:[%s3810_s13 + $0x30] sm:$0xf0]  ;;  %v2350_v31 = vld [vmem:[%s3810_s13 + $0x28] sm:$0xf] }
 0x69e   :  { %v1099_v37 = vsel %vm599_vm14, %v3287_v53, %v2708_v35  ;;  %v1100_v41 = vsel %vm599_vm14, %v3285_v49, %v2709_v34  ;;  %v2406_v34 = vld [vmem:[%s3810_s13 + $0xa0] sm:$0xf]  ;;  %v2654_v35 = vld [vmem:[%s3810_s13 + $0xac] sm:$0xf0]  ;;  %1560 = vmatpush.bf16.msrb.mxu2 %v2435_v33  ;;  %v2639_v33 = vld [vmem:[%s3810_s13 + $0x34] sm:$0xf0] }
 0x69f   :  { %v1102_v42 = vpack.c.bf16 %v1100_v41, %v1099_v37  ;;  %v2652_v37 = vld [vmem:[%s3810_s13 + $0xa4] sm:$0xf]  ;;  %v2407_v41 = vor.u32 %v2654_v35, %v2406_v34  ;;  %v2347_v35 = vor.u32 %v2636_v27, %v2344_v30 }
 0x6a1   :  { %1184 = vmatmul.bf16.gmra.mxu2 %v1102_v42  ;;  %v2408_v42 = vld [vmem:[%s3810_s13 + $0xb0] sm:$0xf0]  ;;  %1504 = vmatpush.bf16.msra.mxu3 %v2407_v41  ;;  %v2637_v41 = vld [vmem:[%s3810_s13 + $0x2c] sm:$0xf] }
 0x6f2   :  { %v1180_v43 = vpop.f32.mrf.mxu2 }
 0x6f3   :  { %v1181_v45 = vadd.f32 %v2713_v48, %v1180_v43  ;;  %v2411_v43 = vor.u32 %v2652_v37, %v2408_v42  ;;  %v2351_v37 = vor.u32 %v2639_v33, %v2350_v31  ;;  %v2352_v42 = vld [vmem:[%s3810_s13 + $0x38] sm:$0xf0] }
 0x6f5   :  { %v1194_v29 = vmul.f32 %v2714_v47, %v1181_v45  ;;  %1523 = vmatpush.bf16.msrb.mxu0 %v2411_v43  ;;  %v2355_v43 = vor.u32 %v2637_v41, %v2352_v42 }
 0x6f7   :  { %v3358_v50 = vadd.f32 %v1194_v29, %v3001_v32  ;;  %v2653_v29 = vld [vmem:[%s3810_s13 + $0xac] sm:$0xf] }
 0x6f9   :  { %1204 = vadd.xlane.f32.xlu2 %v3358_v50 }
 0x6fa   :  { %v1182_v53 = vpop.f32.mrf.mxu2 }
 0x6fb   :  { %v1183_v49 = vadd.f32 %v2713_v48, %v1182_v53  ;;  %v2416_v53 = vld [vmem:[%s3810_s13 + $0xb8] sm:$0xf0] }
 0x6fd   :  { %v1195_v55 = vmul.f32 %v2714_v47, %v1183_v49  ;;  %v2419_v49 = vor.u32 %v2653_v29, %v2416_v53  ;;  %v2632_v29 = vld [vmem:[%s3810_s13 + $0x4] sm:$0xf]  ;;  %v2328_v53 = vld [vmem:[%s3810_s13 + $0x10] sm:$0xf0] }
 0x6ff   :  { %v3362_v57 = vadd.f32 %v1195_v55, %v3004_v36  ;;  %v2390_v55 = vld [vmem:[%s3810_s13 + $0x80] sm:$0xf]  ;;  %1561 = vmatpush.bf16.msrb.mxu2 %v2419_v49 }
 0x701   :  { %1206 = vadd.xlane.f32.xlu0 %v3362_v57 }
 0x724   :  { %v1185_v59 = vpop.f32.mrf.mxu2 }
 0x725   :  { %v1186_v60 = vadd.f32 %v2713_v48, %v1185_v59  ;;  %v2650_v59 = vld [vmem:[%s3810_s13 + $0x8c] sm:$0xf0] }
 0x727   :  { %v1196_v61 = vmul.f32 %v2714_v47, %v1186_v60  ;;  %v2648_v60 = vld [vmem:[%s3810_s13 + $0x84] sm:$0xf] }
 0x729   :  { %v3366_v54 = vadd.f32 %v1196_v61, %v3007_v40  ;;  %v2391_v61 = vor.u32 %v2650_v59, %v2390_v55  ;;  %v2331_v55 = vor.u32 %v2632_v29, %v2328_v53  ;;  %v2334_v59 = vld [vmem:[%s3810_s13 + $0x8] sm:$0xf] }
 0x72b   :  { %1208 = vadd.xlane.f32.xlu1 %v3366_v54  ;;  %1505 = vmatpush.bf16.msra.mxu3 %v2391_v61  ;;  %v2633_v61 = vld [vmem:[%s3810_s13 + $0xc] sm:$0xf] }
 0x72c   :  { %v1187_v32 = vpop.f32.mrf.mxu2 }
 0x72d   :  { %v1188_v52 = vadd.f32 %v2713_v48, %v1187_v32  ;;  %v2414_v48 = vld [vmem:[%s3810_s13 + $0xa8] sm:$0xf]  ;;  %v2392_v32 = vld [vmem:[%s3810_s13 + $0x90] sm:$0xf0] }
 0x72f   :  { %v1197_v63 = vmul.f32 %v2714_v47, %v1188_v52  ;;  %v2655_v47 = vld [vmem:[%s3810_s13 + $0xb4] sm:$0xf0]  ;;  %v2398_v52 = vld [vmem:[%s3810_s13 + $0x88] sm:$0xf] }
 0x730   :  { %v2415_v45 = vor.u32 %v2655_v47, %v2414_v48  ;;  %v2326_v48 = vld [vmem:[%s3810_s13] sm:$0xf] }
 0x731   :  { %v3370_v1 = vadd.f32 %v1197_v63, %v3010_v44  ;;  %v2651_v63 = vld [vmem:[%s3810_s13 + $0x94] sm:$0xf0] }
 0x732   :  { %1542 = vmatpush.bf16.msra.mxu1 %v2415_v45  ;;  %v2634_v45 = vld [vmem:[%s3810_s13 + $0xc] sm:$0xf0] }
 0x733   :  { %1210 = vadd.xlane.f32.xlu2 %v3370_v1  ;;  %v2327_v49 = vor.u32 %v2634_v45, %v2326_v48 }
 0x76c   :  { %v1205_v36 = vpop.xlane.xlu2 %1204 }
 0x76d   :  { %v1212_v3 = vmul.f32 %v1205_v36, %v3013_v51  ;;  %v2395_v36 = vor.u32 %v2648_v60, %v2392_v32  ;;  %v2635_v60 = vld [vmem:[%s3810_s13 + $0x14] sm:$0xf0] }
 0x76f   :  { %v3375_v4 = vsub.f32 %v3358_v50, %v1212_v3  ;;  %v2399_v3 = vor.u32 %v2651_v63, %v2398_v52  ;;  %1524 = vmatpush.bf16.msrb.mxu0 %v2395_v36  ;;  %v2335_v52 = vor.u32 %v2635_v60, %v2334_v59  ;;  %v2336_v63 = vld [vmem:[%s3810_s13 + $0x18] sm:$0xf0] }
 0x770   :  { %v2339_v36 = vor.u32 %v2633_v61, %v2336_v63  ;;  %v2679_v61 = vld [vmem:[%s3812_s15 + $0x78] sm:$0xff] }
 0x771   :  { %v1220_v40 = vmul.f32 %v3375_v4, %v3375_v4  ;;  %1543 = vmatpush.bf16.msra.mxu1 %v2399_v3  ;;  %v2695_v63 = vld [vmem:[%s3812_s15 + $0xf8] sm:$0xff] }
 0x773   :  { %1224 = vadd.xlane.f32.xlu0 %v1220_v40  ;;  %v2649_v40 = vld [vmem:[%s3810_s13 + $0x8c] sm:$0xf] }
 0x774   :  { %v1207_v5 = vpop.xlane.xlu0 %1206 }
 0x775   :  { %v1213_v0 = vmul.f32 %v1207_v5, %v3013_v51  ;;  %v2400_v5 = vld [vmem:[%s3810_s13 + $0x98] sm:$0xf0] }
 0x777   :  { %v3381_v6 = vsub.f32 %v3362_v57, %v1213_v0  ;;  %v2403_v0 = vor.u32 %v2649_v40, %v2400_v5 }
 0x779   :  { %v1221_v44 = vmul.f32 %v3381_v6, %v3381_v6  ;;  %1562 = vmatpush.bf16.msrb.mxu2 %v2403_v0 }
 0x77b   :  { %1226 = vadd.xlane.f32.xlu2 %v1221_v44  ;;  %v2374_v44 = vld [vmem:[%s3810_s13 + $0x60] sm:$0xf] }
 0x77d   :  { %1563 = vmatpush.bf16.msrb.mxu2 %v2387_v18 }
 0x781   :  { %1564 = vmatpush.bf16.msrb.mxu2 %v2371_v26 }
 0x785   :  { %1565 = vmatpush.bf16.msrb.mxu2 %v2355_v43 }
 0x789   :  { %1566 = vmatpush.bf16.msrb.mxu2 %v2339_v36  ;;  %v2677_v36 = vld [vmem:[%s3812_s15 + $0x68] sm:$0xff] }
 0x78d   :  { %2047 = vmatpush.bf16.msra.mxu2 %v2695_v63 }
 0x79e   :  { %v1209_v7 = vpop.xlane.xlu1 %1208 }
 0x79f   :  { %v1214_v58 = vmul.f32 %v1209_v7, %v3013_v51  ;;  %v2646_v7 = vld [vmem:[%s3810_s13 + $0x6c] sm:$0xf0] }
 0x7a1   :  { %v3387_v10 = vsub.f32 %v3366_v54, %v1214_v58  ;;  %v2644_v58 = vld [vmem:[%s3810_s13 + $0x64] sm:$0xf] }
 0x7a3   :  { %v1222_v39 = vmul.f32 %v3387_v10, %v3387_v10 }
 0x7a5   :  { %1228 = vadd.xlane.f32.xlu0 %v1222_v39  ;;  %v2375_v39 = vor.u32 %v2646_v7, %v2374_v44 }
 0x7a6   :  { %v1211_v11 = vpop.xlane.xlu2 %1210 }
 0x7a7   :  { %v1215_v12 = vmul.f32 %v1211_v11, %v3013_v51  ;;  %v2376_v11 = vld [vmem:[%s3810_s13 + $0x70] sm:$0xf0]  ;;  %1506 = vmatpush.bf16.msra.mxu3 %v2375_v39 }
 0x7a8   :  { %v2379_v15 = vor.u32 %v2644_v58, %v2376_v11 }
 0x7a9   :  { %v3393_v13 = vsub.f32 %v3370_v1, %v1215_v12  ;;  %v2382_v12 = vld [vmem:[%s3810_s13 + $0x68] sm:$0xf] }
 0x7aa   :  { %1525 = vmatpush.bf16.msrb.mxu0 %v2379_v15 }
 0x7ab   :  { %v1223_v14 = vmul.f32 %v3393_v13, %v3393_v13  ;;  %1507 = vmatpush.bf16.msra.mxu3 %v2359_v8 }
 0x7ad   :  { %1230 = vadd.xlane.f32.xlu1 %v1223_v14  ;;  %v2647_v14 = vld [vmem:[%s3810_s13 + $0x74] sm:$0xf0]  ;;  %s2830_s13 = smov 4  }
 0x7ae   :  { %v2383_v16 = vor.u32 %v2647_v14, %v2382_v12  ;;  %1526 = vmatpush.bf16.msrb.mxu0 %v2363_v23 }
 0x7af   :  { %1508 = vmatpush.bf16.msra.mxu3 %v2343_v28 }
 0x7b0   :  { %1544 = vmatpush.bf16.msra.mxu1 %v2383_v16 }
 0x7b2   :  { %1527 = vmatpush.bf16.msrb.mxu0 %v2347_v35 }
 0x7b3   :  { %1509 = vmatpush.bf16.msra.mxu3 %v2327_v49 }
 0x7b4   :  { %1545 = vmatpush.bf16.msra.mxu1 %v2367_v2 }
 0x7b6   :  { %1528 = vmatpush.bf16.msrb.mxu0 %v2331_v55 }
 0x7b8   :  { %1546 = vmatpush.bf16.msra.mxu1 %v2351_v37 }
 0x7ba   :  { %2009 = vmatpush.bf16.msra.mxu0 %v2679_v61 }
 0x7bc   :  { %1547 = vmatpush.bf16.msra.mxu1 %v2335_v52  ;;  %v2671_v52 = vld [vmem:[%s3812_s15 + $0x38] sm:$0xff] }
 0x7bd   :  { %1990 = vmatpush.bf16.msrb.mxu3 %v2671_v52 }
 0x7e6   :  { %v1225_v34 = vpop.xlane.xlu0 %1224 }
 0x7e7   :  { %v1232_v47 = vmul.f32 %v1225_v34, %v3013_v51 }
 0x7e9   :  { %v1236_v32 = vadd.f32 1e-06, %v1232_v47 }
 0x7eb   :  { %2761 = vrsqrt.f32 %v1236_v32  ;;  %vm1246_vm1 = vweird.f32 %v1236_v32 }
 0x7ee   :  { %v1227_v3 = vpop.xlane.xlu2 %1226 }
 0x7ef   :  { %v1233_v40 = vmul.f32 %v1227_v3, %v3013_v51  ;;  %v2685_v3 = vld [vmem:[%s3812_s15 + $0xa8] sm:$0xff] }
 0x7f1   :  { %v2762_v5 = vpop.eup %2761  ;;  %v1237_v0 = vadd.f32 1e-06, %v1233_v40  ;;  %v2670_v40 = vld [vmem:[%s3812_s15 + $0x30] sm:$0xff] }
 0x7f2   :  { %v1241_v44 = vmul.f32 %v2762_v5, %v1236_v32  ;;  %vm1247_vm0 = vweird.f32 %v2762_v5  ;;  %v2686_v32 = vld [vmem:[%s3812_s15 + $0xb0] sm:$0xff]  ;;  %1991 = vmatpush.bf16.msrb.mxu3 %v2670_v40 }
 0x7f3   :  { %2763 = vrsqrt.f32 %v1237_v0  ;;  %vm1248_vm2 = vmor %vm1246_vm1, %vm1247_vm0  ;;  %vm1256_vm4 = vweird.f32 %v1237_v0 }
 0x7f4   :  { %v1242_v7 = vmul.f32 %v2762_v5, %v1241_v44  ;;  %v2684_v44 = vld [vmem:[%s3812_s15 + $0xa0] sm:$0xff] }
 0x7f6   :  { %v1243_v58 = vmul.f32 0.5, %v1242_v7  ;;  %v2669_v7 = vld [vmem:[%s3812_s15 + $0x28] sm:$0xff] }
 0x7f7   :  { %1992 = vmatpush.bf16.msrb.mxu3 %v2669_v7 }
 0x7f8   :  { %v1244_v39 = vsub.f32 1.5, %v1243_v58  ;;  %v2693_v58 = vld [vmem:[%s3812_s15 + $0xe8] sm:$0xff] }
 0x7f9   :  { %v2764_v11 = vpop.eup %2763 }
 0x7fa   :  { %v1245_v12 = vmul.f32 %v2762_v5, %v1244_v39  ;;  %v1251_v14 = vmul.f32 %v2764_v11, %v1237_v0  ;;  %vm1257_vm3 = vweird.f32 %v2764_v11  ;;  %v2676_v0 = vld [vmem:[%s3812_s15 + $0x60] sm:$0xff]  ;;  %v2675_v39 = vld [vmem:[%s3812_s15 + $0x58] sm:$0xff] }
 0x7fb   :  { %vm1258_vm5 = vmor %vm1256_vm4, %vm1257_vm3 }
 0x7fc   :  { %v1252_v15 = vmul.f32 %v2764_v11, %v1251_v14  ;;  %v1249_v16 = vsel %vm1248_vm2, %v2762_v5, %v1245_v12  ;;  %v2694_v5 = vld [vmem:[%s3812_s15 + $0xf0] sm:$0xff]  ;;  %v2668_v12 = vld [vmem:[%s3812_s15 + $0x20] sm:$0xff] }
 0x7fd   :  { %v1280_v18 = vmul.f32 %v1249_v16, %v3375_v4  ;;  %2048 = vmatpush.bf16.msra.mxu2 %v2694_v5  ;;  %v2692_v14 = vld [vmem:[%s3812_s15 + $0xe0] sm:$0xff]  ;;  %1993 = vmatpush.bf16.msrb.mxu3 %v2668_v12  ;;  %v2682_v16 = vld [vmem:[%s3812_s15 + $0x90] sm:$0xff] }
 0x7fe   :  { %v1253_v17 = vmul.f32 0.5, %v1252_v15  ;;  %v2674_v15 = vld [vmem:[%s3812_s15 + $0x50] sm:$0xff] }
 0x7ff   :  { %v1287_v62 = vmul.f32 %v2715_v19, %v1280_v18  ;;  %v1332_v18 = vld [vmem:[%s3811_s14] sm:$0xf] }
 0x800   :  { %v1254_v56 = vsub.f32 1.5, %v1253_v17  ;;  %v2667_v17 = vld [vmem:[%s3812_s15 + $0x18] sm:$0xff] }
 0x801   :  { %v1294_v23 = vadd.f32 %v2716_v9, %v1287_v62  ;;  %2049 = vmatpush.bf16.msra.mxu2 %v2693_v58  ;;  %1994 = vmatpush.bf16.msrb.mxu3 %v2667_v17  ;;  %v2672_v62 = vld [vmem:[%s3812_s15 + $0x40] sm:$0xff] }
 0x802   :  { %v1255_v20 = vmul.f32 %v2764_v11, %v1254_v56  ;;  %v2691_v56 = vld [vmem:[%s3812_s15 + $0xd8] sm:$0xff] }
 0x804   :  { %v1259_v21 = vsel %vm1258_vm5, %v2764_v11, %v1255_v20  ;;  %v2683_v11 = vld [vmem:[%s3812_s15 + $0x98] sm:$0xff]  ;;  %v2681_v20 = vld [vmem:[%s3812_s15 + $0x88] sm:$0xff] }
 0x805   :  { %v1281_v8 = vmul.f32 %v1259_v21, %v3381_v6  ;;  %2050 = vmatpush.bf16.msra.mxu2 %v2692_v14  ;;  %v2666_v21 = vld [vmem:[%s3812_s15 + $0x10] sm:$0xff] }
 0x806   :  { %1995 = vmatpush.bf16.msrb.mxu3 %v2666_v21 }
 0x807   :  { %v1288_v22 = vmul.f32 %v2715_v19, %v1281_v8  ;;  %v2690_v8 = vld [vmem:[%s3812_s15 + $0xd0] sm:$0xff] }
 0x809   :  { %v1295_v2 = vadd.f32 %v2716_v9, %v1288_v22  ;;  %2051 = vmatpush.bf16.msra.mxu2 %v2691_v56  ;;  %v3690_v22 = vperm.slane %v1332_v18, 1 }
 0x80b   :  { %v1298_v24 = vpack.c.bf16 %v1295_v2, %v1294_v23  ;;  %v3692_v23 = vperm.slane %v1332_v18, 2  ;;  %v2665_v2 = vld [vmem:[%s3812_s15 + $0x8] sm:$0xff] }
 0x80c   :  { %1996 = vmatpush.bf16.msrb.mxu3 %v2665_v2 }
 0x80d   :  { %1510 = vmatmul.bf16.vlgmr.msra.gmra.mxu3 %v1298_v24  ;;  %1529 = vmatmul.bf16.vlgmr.msrb.gmra.mxu0 %v1298_v24 }
 0x80e   :  { %1548 = vmatmul.bf16.vlgmr.msra.gmra.mxu1 %v1298_v24  ;;  %1567 = vmatmul.bf16.vlgmr.msrb.gmra.mxu2 %v1298_v24  ;;  %v2689_v24 = vld [vmem:[%s3812_s15 + $0xc8] sm:$0xff] }
 0x80f   :  { %2052 = vmatpush.bf16.msra.mxu2 %v2690_v8 }
 0x813   :  { %2053 = vmatpush.bf16.msra.mxu2 %v2689_v24 }
 0x818   :  { %v1229_v4 = vpop.xlane.xlu0 %1228 }
 0x819   :  { %v1234_v25 = vmul.f32 %v1229_v4, %v3013_v51 }
 0x81b   :  { %v1238_v26 = vadd.f32 1e-06, %v1234_v25 }
 0x81d   :  { %2765 = vrsqrt.f32 %v1238_v26  ;;  %vm1266_vm7 = vweird.f32 %v1238_v26 }
 0x820   :  { %v1231_v38 = vpop.xlane.xlu1 %1230 }
 0x821   :  { %v1235_v6 = vmul.f32 %v1231_v38, %v3013_v51 }
 0x823   :  { %v2766_v46 = vpop.eup %2765  ;;  %v1239_v27 = vadd.f32 1e-06, %v1235_v6 }
 0x824   :  { %v1261_v28 = vmul.f32 %v2766_v46, %v1238_v26  ;;  %vm1267_vm6 = vweird.f32 %v2766_v46 }
 0x825   :  { %2767 = vrsqrt.f32 %v1239_v27  ;;  %vm1268_vm8 = vmor %vm1266_vm7, %vm1267_vm6  ;;  %vm1276_vm10 = vweird.f32 %v1239_v27 }
 0x826   :  { %v1262_v30 = vmul.f32 %v2766_v46, %v1261_v28  ;;  %v2688_v28 = vld [vmem:[%s3812_s15 + $0xc0] sm:$0xff] }
 0x827   :  { %2054 = vmatpush.bf16.msra.mxu2 %v2688_v28 }
 0x828   :  { %v1263_v31 = vmul.f32 0.5, %v1262_v30 }
 0x82a   :  { %v1264_v33 = vsub.f32 1.5, %v1263_v31  ;;  %v3716_v31 = vperm.slane %v1332_v18, 3 }
 0x82b   :  { %v2768_v34 = vpop.eup %2767 }
 0x82c   :  { %v1265_v35 = vmul.f32 %v2766_v46, %v1264_v33  ;;  %v1271_v37 = vmul.f32 %v2768_v34, %v1239_v27  ;;  %vm1277_vm9 = vweird.f32 %v2768_v34  ;;  %v2664_v27 = vld [vmem:[%s3812_s15] sm:$0xff] }
 0x82d   :  { %vm1278_vm11 = vmor %vm1276_vm10, %vm1277_vm9  ;;  %1997 = vmatpush.bf16.msrb.mxu3 %v2664_v27 }
 0x82e   :  { %v1272_v41 = vmul.f32 %v2768_v34, %v1271_v37  ;;  %v1269_v42 = vsel %vm1268_vm8, %v2766_v46, %v1265_v35  ;;  %v3707_v46 = vperm.slane %v1332_v18, 0 }
 0x82f   :  { %v1282_v51 = vmul.f32 %v1269_v42, %v3387_v10  ;;  %v2687_v10 = vld [vmem:[%s3812_s15 + $0xb8] sm:$0xff] }
 0x830   :  { %v1273_v48 = vmul.f32 0.5, %v1272_v41  ;;  %2028 = vmatpush.bf16.msrb.mxu1 %v2687_v10 }
 0x831   :  { %v1289_v53 = vmul.f32 %v2715_v19, %v1282_v51 }
 0x832   :  { %v1274_v47 = vsub.f32 1.5, %v1273_v48 }
 0x833   :  { %v1296_v55 = vadd.f32 %v2716_v9, %v1289_v53 }
 0x834   :  { %v1275_v43 = vmul.f32 %v2768_v34, %v1274_v47  ;;  %2029 = vmatpush.bf16.msrb.mxu1 %v2686_v32 }
 0x836   :  { %v1279_v45 = vsel %vm1278_vm11, %v2768_v34, %v1275_v43 }
 0x837   :  { %v1283_v29 = vmul.f32 %v1279_v45, %v3393_v13  ;;  %v2678_v13 = vld [vmem:[%s3812_s15 + $0x70] sm:$0xff] }
 0x838   :  { %2010 = vmatpush.bf16.msra.mxu0 %v2678_v13  ;;  %2030 = vmatpush.bf16.msrb.mxu1 %v2685_v3 }
 0x839   :  { %v1290_v49 = vmul.f32 %v2715_v19, %v1283_v29  ;;  %v2673_v19 = vld [vmem:[%s3812_s15 + $0x48] sm:$0xff] }
 0x83b   :  { %v1297_v59 = vadd.f32 %v2716_v9, %v1290_v49  ;;  %v2680_v9 = vld [vmem:[%s3812_s15 + $0x80] sm:$0xff] }
 0x83c   :  { %2011 = vmatpush.bf16.msra.mxu0 %v2677_v36  ;;  %2031 = vmatpush.bf16.msrb.mxu1 %v2684_v44 }
 0x83d   :  { %v1299_v60 = vpack.c.bf16 %v1297_v59, %v1296_v55 }
 0x83f   :  { %1515 = vmatmul.bf16.gmra.mxu3 %v1299_v60  ;;  %1534 = vmatmul.bf16.gmra.mxu0 %v1299_v60 }
 0x840   :  { %1553 = vmatmul.bf16.gmra.mxu1 %v1299_v60  ;;  %1572 = vmatmul.bf16.gmra.mxu2 %v1299_v60 }
 0x841   :  { %2012 = vmatpush.bf16.msra.mxu0 %v2676_v0  ;;  %2032 = vmatpush.bf16.msrb.mxu1 %v2683_v11 }
 0x845   :  { %2013 = vmatpush.bf16.msra.mxu0 %v2675_v39  ;;  %2033 = vmatpush.bf16.msrb.mxu1 %v2682_v16 }
 0x849   :  { %2014 = vmatpush.bf16.msra.mxu0 %v2674_v15  ;;  %2034 = vmatpush.bf16.msrb.mxu1 %v2681_v20 }
 0x84d   :  { %2015 = vmatpush.bf16.msra.mxu0 %v2673_v19  ;;  %2035 = vmatpush.bf16.msrb.mxu1 %v2680_v9 }
 0x851   :  { %2016 = vmatpush.bf16.msra.mxu0 %v2672_v62 }
 0x88a   :  { %v1530_v4 = vpop.f32.mrf.mxu0 }
 0x88b   :  { %v3701_v25 = vadd.f32 %v1530_v4, %v3690_v22  ;;  %v1549_v26 = vpop.f32.mrf.mxu1 }
 0x88c   :  { %v3704_v38 = vadd.f32 %v1549_v26, %v3692_v23 }
 0x88d   :  { %v1595_v6 = vmul.f32 0.044715, %v3701_v25 }
 0x88e   :  { %v1596_v30 = vmul.f32 0.044715, %v3704_v38 }
 0x88f   :  { %v1611_v33 = vmul.f32 %v1595_v6, %v3701_v25 }
 0x890   :  { %v1612_v34 = vmul.f32 %v1596_v30, %v3704_v38  ;;  %v1511_v35 = vpop.f32.mrf.mxu3 }
 0x891   :  { %v1627_v37 = vmul.f32 %v1611_v33, %v3701_v25  ;;  %v3722_v41 = vadd.f32 %v1511_v35, %v3707_v46  ;;  %v1568_v42 = vpop.f32.mrf.mxu2  ;;  %v1579_v35 = vmul.f32 0.5, %v3701_v25 }
 0x892   :  { %v1628_v48 = vmul.f32 %v1612_v34, %v3704_v38  ;;  %v3726_v47 = vadd.f32 %v1568_v42, %v3716_v31  ;;  %v1532_v51 = vpop.f32.mrf.mxu0 }
 0x893   :  { %v1643_v43 = vadd.f32 %v1627_v37, %v3701_v25  ;;  %v1594_v45 = vmul.f32 0.044715, %v3722_v41  ;;  %v1533_v29 = vadd.f32 %v1532_v51, %v3690_v22  ;;  %v1551_v53 = vpop.f32.mrf.mxu1  ;;  %v1580_v51 = vmul.f32 0.5, %v3704_v38 }
 0x894   :  { %v1644_v49 = vadd.f32 %v1628_v48, %v3704_v38  ;;  %v1597_v55 = vmul.f32 0.044715, %v3726_v47  ;;  %v1552_v59 = vadd.f32 %v1551_v53, %v3692_v23  ;;  %v1578_v25 = vmul.f32 0.5, %v3722_v41 }
 0x895   :  { %v1610_v60 = vmul.f32 %v1594_v45, %v3722_v41  ;;  %v1599_v61 = vmul.f32 0.044715, %v1533_v29  ;;  %v1659_v32 = vmul.f32 0.7978846, %v1643_v43  ;;  %v1583_v37 = vmul.f32 0.5, %v1533_v29 }
 0x896   :  { %v1613_v10 = vmul.f32 %v1597_v55, %v3726_v47  ;;  %v1600_v13 = vmul.f32 0.044715, %v1552_v59  ;;  %v1660_v36 = vmul.f32 0.7978846, %v1644_v49  ;;  %v1584_v43 = vmul.f32 0.5, %v1552_v59 }
 0x897   :  { %v1626_v52 = vmul.f32 %v1610_v60, %v3722_v41  ;;  %v1615_v63 = vmul.f32 %v1599_v61, %v1533_v29  ;;  %2769 = vtanh.f32 %v1659_v32  ;;  %v1581_v38 = vmul.f32 0.5, %v3726_v47 }
 0x898   :  { %v1629_v3 = vmul.f32 %v1613_v10, %v3726_v47  ;;  %v1616_v40 = vmul.f32 %v1600_v13, %v1552_v59  ;;  %v1513_v5 = vpop.f32.mrf.mxu3  ;;  %2771 = vtanh.f32 %v1660_v36 }
 0x899   :  { %v1642_v0 = vadd.f32 %v1626_v52, %v3722_v41  ;;  %v1631_v44 = vmul.f32 %v1615_v63, %v1533_v29  ;;  %v1514_v7 = vadd.f32 %v1513_v5, %v3707_v46  ;;  %v1570_v58 = vpop.f32.mrf.mxu2 }
 0x89a   :  { %v1645_v39 = vadd.f32 %v1629_v3, %v3726_v47  ;;  %v1632_v11 = vmul.f32 %v1616_v40, %v1552_v59  ;;  %v1571_v12 = vadd.f32 %v1570_v58, %v3716_v31 }
 0x89b   :  { %v1647_v14 = vadd.f32 %v1631_v44, %v1533_v29  ;;  %v1598_v15 = vmul.f32 0.044715, %v1514_v7  ;;  %v1658_v56 = vmul.f32 0.7978846, %v1642_v0  ;;  %v1582_v29 = vmul.f32 0.5, %v1514_v7 }
 0x89c   :  { %v1648_v16 = vadd.f32 %v1632_v11, %v1552_v59  ;;  %v1601_v17 = vmul.f32 0.044715, %v1571_v12  ;;  %v1661_v20 = vmul.f32 0.7978846, %v1645_v39  ;;  %v1585_v59 = vmul.f32 0.5, %v1571_v12 }
 0x89d   :  { %v1663_v18 = vmul.f32 0.7978846, %v1647_v14  ;;  %v1614_v19 = vmul.f32 %v1598_v15, %v1514_v7  ;;  %v2770_v2 = vpop.eup %2769 }
 0x89e   :  { %v1664_v21 = vmul.f32 0.7978846, %v1648_v16  ;;  %v1617_v8 = vmul.f32 %v1601_v17, %v1571_v12  ;;  %v2772_v4 = vpop.eup %2771  ;;  %v1691_v28 = vadd.f32 1.0, %v2770_v2 }
 0x89f   :  { %v1630_v62 = vmul.f32 %v1614_v19, %v1514_v7  ;;  %2773 = vtanh.f32 %v1663_v18  ;;  %v1692_v33 = vadd.f32 1.0, %v2772_v4 }
 0x8a0   :  { %v1633_v9 = vmul.f32 %v1617_v8, %v1571_v12  ;;  %2775 = vtanh.f32 %v1664_v21  ;;  %v1707_v49 = vmul.f32 %v1691_v28, %v1579_v35 }
 0x8a1   :  { %v1646_v24 = vadd.f32 %v1630_v62, %v1514_v7  ;;  %2777 = vtanh.f32 %v1658_v56  ;;  %v1708_v60 = vmul.f32 %v1692_v33, %v1580_v51 }
 0x8a2   :  { %v1649_v26 = vadd.f32 %v1633_v9, %v1571_v12  ;;  %2779 = vtanh.f32 %v1661_v20 }
 0x8a3   :  { %v1662_v6 = vmul.f32 0.7978846, %v1646_v24 }
 0x8a4   :  { %v1665_v27 = vmul.f32 0.7978846, %v1649_v26 }
 0x8a5   :  { %v2774_v30 = vpop.eup %2773  ;;  %2781 = vtanh.f32 %v1662_v6 }
 0x8a6   :  { %v2776_v34 = vpop.eup %2775  ;;  %v1695_v42 = vadd.f32 1.0, %v2774_v30  ;;  %2783 = vtanh.f32 %v1665_v27 }
 0x8a7   :  { %v2778_v48 = vpop.eup %2777  ;;  %v1696_v45 = vadd.f32 1.0, %v2776_v34 }
 0x8a8   :  { %v2780_v53 = vpop.eup %2779  ;;  %v1711_v55 = vmul.f32 %v1695_v42, %v1583_v37  ;;  %v1690_v13 = vadd.f32 1.0, %v2778_v48 }
 0x8a9   :  { %v1712_v61 = vmul.f32 %v1696_v45, %v1584_v43  ;;  %v1693_v63 = vadd.f32 1.0, %v2780_v53 }
 0x8aa   :  { %v1723_v10 = vpack.c.bf16 %v1711_v55, %v1707_v49  ;;  %v1706_v5 = vmul.f32 %v1690_v13, %v1578_v25 }
 0x8ab   :  { %v2782_v32 = vpop.eup %2781  ;;  %v1724_v52 = vpack.c.bf16 %v1712_v61, %v1708_v60  ;;  %v1709_v44 = vmul.f32 %v1693_v63, %v1581_v38 }
 0x8ac   :  { %v2784_v36 = vpop.eup %2783  ;;  %2017 = vmatmul.bf16.vlgmr.msra.gmra.mxu0 %v1723_v10  ;;  %v1694_v3 = vadd.f32 1.0, %v2782_v32 }
 0x8ad   :  { %2036 = vmatmul.bf16.vlgmr.msrb.gmra.mxu1 %v1724_v52  ;;  %v1697_v40 = vadd.f32 1.0, %v2784_v36 }
 0x8ae   :  { %v1710_v0 = vmul.f32 %v1694_v3, %v1582_v29 }
 0x8af   :  { %v1713_v58 = vmul.f32 %v1697_v40, %v1585_v59 }
 0x8b0   :  { %v1722_v39 = vpack.c.bf16 %v1710_v0, %v1706_v5 }
 0x8b1   :  { %v1725_v11 = vpack.c.bf16 %v1713_v58, %v1709_v44 }
 0x8b2   :  { %1998 = vmatmul.bf16.vlgmr.msrb.gmra.mxu3 %v1722_v39 }
 0x8b3   :  { %2055 = vmatmul.bf16.vlgmr.msra.gmra.mxu2 %v1725_v11 }
 0x8bc   :  { %v1535_v14 = vpop.f32.mrf.mxu0 }
 0x8bd   :  { %v3747_v15 = vadd.f32 %v1535_v14, %v3690_v22  ;;  %v1554_v41 = vpop.f32.mrf.mxu1 }
 0x8be   :  { %v3750_v7 = vadd.f32 %v1554_v41, %v3692_v23 }
 0x8bf   :  { %v1603_v47 = vmul.f32 0.044715, %v3747_v15 }
 0x8c0   :  { %v1604_v12 = vmul.f32 0.044715, %v3750_v7 }
 0x8c1   :  { %v1619_v16 = vmul.f32 %v1603_v47, %v3747_v15  ;;  %v1587_v47 = vmul.f32 0.5, %v3747_v15 }
 0x8c2   :  { %v1516_v17 = vpop.f32.mrf.mxu3  ;;  %v1620_v56 = vmul.f32 %v1604_v12, %v3750_v7 }
 0x8c3   :  { %v3757_v18 = vadd.f32 %v1516_v17, %v3707_v46  ;;  %v1573_v19 = vpop.f32.mrf.mxu2  ;;  %v1635_v20 = vmul.f32 %v1619_v16, %v3747_v15 }
 0x8c4   :  { %v3761_v21 = vadd.f32 %v1573_v19, %v3716_v31  ;;  %v1537_v8 = vpop.f32.mrf.mxu0  ;;  %v1636_v62 = vmul.f32 %v1620_v56, %v3750_v7  ;;  %v1588_v56 = vmul.f32 0.5, %v3750_v7 }
 0x8c5   :  { %v1602_v9 = vmul.f32 0.044715, %v3757_v18  ;;  %v1538_v2 = vadd.f32 %v1537_v8, %v3690_v22  ;;  %v1556_v24 = vpop.f32.mrf.mxu1  ;;  %v1651_v4 = vadd.f32 %v1635_v20, %v3747_v15  ;;  %v1586_v15 = vmul.f32 0.5, %v3757_v18 }
 0x8c6   :  { %v1605_v26 = vmul.f32 0.044715, %v3761_v21  ;;  %v1557_v6 = vadd.f32 %v1556_v24, %v3692_v23  ;;  %v1652_v27 = vadd.f32 %v1636_v62, %v3750_v7  ;;  %v1589_v7 = vmul.f32 0.5, %v3761_v21 }
 0x8c7   :  { %v1607_v28 = vmul.f32 0.044715, %v1538_v2  ;;  %v1618_v30 = vmul.f32 %v1602_v9, %v3757_v18  ;;  %v1667_v37 = vmul.f32 0.7978846, %v1651_v4  ;;  %v1591_v12 = vmul.f32 0.5, %v1538_v2 }
 0x8c8   :  { %v1608_v33 = vmul.f32 0.044715, %v1557_v6  ;;  %v1621_v34 = vmul.f32 %v1605_v26, %v3761_v21  ;;  %v1668_v51 = vmul.f32 0.7978846, %v1652_v27  ;;  %v1592_v19 = vmul.f32 0.5, %v1557_v6 }
 0x8c9   :  { %v1623_v35 = vmul.f32 %v1607_v28, %v1538_v2  ;;  %v1634_v42 = vmul.f32 %v1618_v30, %v3757_v18  ;;  %2785 = vtanh.f32 %v1667_v37 }
 0x8ca   :  { %v1518_v22 = vpop.f32.mrf.mxu3  ;;  %v1624_v48 = vmul.f32 %v1608_v33, %v1557_v6  ;;  %v1637_v43 = vmul.f32 %v1621_v34, %v3761_v21  ;;  %2787 = vtanh.f32 %v1668_v51 }
 0x8cb   :  { %v1519_v45 = vadd.f32 %v1518_v22, %v3707_v46  ;;  %v1575_v23 = vpop.f32.mrf.mxu2  ;;  %v1639_v53 = vmul.f32 %v1623_v35, %v1538_v2  ;;  %v1650_v49 = vadd.f32 %v1634_v42, %v3757_v18 }
 0x8cc   :  { %v1576_v55 = vadd.f32 %v1575_v23, %v3716_v31  ;;  %v1640_v60 = vmul.f32 %v1624_v48, %v1557_v6  ;;  %v1653_v61 = vadd.f32 %v1637_v43, %v3761_v21 }
 0x8cd   :  { %v1606_v10 = vmul.f32 0.044715, %v1519_v45  ;;  %v1655_v13 = vadd.f32 %v1639_v53, %v1538_v2  ;;  %v1666_v25 = vmul.f32 0.7978846, %v1650_v49  ;;  %v1590_v2 = vmul.f32 0.5, %v1519_v45 }
 0x8ce   :  { %v1609_v32 = vmul.f32 0.044715, %v1576_v55  ;;  %v1656_v52 = vadd.f32 %v1640_v60, %v1557_v6  ;;  %v1669_v3 = vmul.f32 0.7978846, %v1653_v61  ;;  %v1593_v6 = vmul.f32 0.5, %v1576_v55 }
 0x8cf   :  { %v1671_v63 = vmul.f32 0.7978846, %v1655_v13  ;;  %v1622_v36 = vmul.f32 %v1606_v10, %v1519_v45  ;;  %v2786_v31 = vpop.eup %2785  ;;  %v2717_v53 = vld [vmem:[%s3813_s16] ss:$0 sm:$0xff]  ;;  %s2829_s16 = smov [#allocation2]  }
 0x8d0   :  { %v1672_v29 = vmul.f32 0.7978846, %v1656_v52  ;;  %v1625_v46 = vmul.f32 %v1609_v32, %v1576_v55  ;;  %v2788_v5 = vpop.eup %2787  ;;  %v1699_v58 = vadd.f32 1.0, %v2786_v31  ;;  %v2718_v10 = vld [vmem:[%s3814_s17] ss:$0 sm:$0xff]  ;;  %s2086_s17 = sshll.u32 %s2829_s16, 4  ;;  %s2087_s17 = int_to_ptr.vmem [resolvable:$true] %s2086_s17 }
 0x8d1   :  { %2789 = vtanh.f32 %v1671_v63  ;;  %v1638_v38 = vmul.f32 %v1622_v36, %v1519_v45  ;;  %v1700_v14 = vadd.f32 1.0, %v2788_v5 }
 0x8d2   :  { %2791 = vtanh.f32 %v1672_v29  ;;  %v1641_v59 = vmul.f32 %v1625_v46, %v1576_v55  ;;  %v1715_v62 = vmul.f32 %v1699_v58, %v1587_v47 }
 0x8d3   :  { %v1654_v40 = vadd.f32 %v1638_v38, %v1519_v45  ;;  %2793 = vtanh.f32 %v1666_v25  ;;  %v1716_v24 = vmul.f32 %v1700_v14, %v1588_v56 }
 0x8d4   :  { %v1657_v0 = vadd.f32 %v1641_v59, %v1576_v55  ;;  %2795 = vtanh.f32 %v1669_v3 }
 0x8d5   :  { %v1670_v44 = vmul.f32 0.7978846, %v1654_v40 }
 0x8d6   :  { %v1673_v39 = vmul.f32 0.7978846, %v1657_v0 }
 0x8d7   :  { %v2790_v11 = vpop.eup %2789  ;;  %2797 = vtanh.f32 %v1670_v44 }
 0x8d8   :  { %v2792_v41 = vpop.eup %2791  ;;  %v1703_v16 = vadd.f32 1.0, %v2790_v11  ;;  %2799 = vtanh.f32 %v1673_v39 }
 0x8d9   :  { %v2794_v17 = vpop.eup %2793  ;;  %v1704_v20 = vadd.f32 1.0, %v2792_v41 }
 0x8da   :  { %v2796_v8 = vpop.eup %2795  ;;  %v1719_v9 = vmul.f32 %v1703_v16, %v1591_v12  ;;  %v1698_v27 = vadd.f32 1.0, %v2794_v17 }
 0x8db   :  { %v1720_v4 = vmul.f32 %v1704_v20, %v1592_v19  ;;  %v1701_v33 = vadd.f32 1.0, %v2796_v8 }
 0x8dc   :  { %v1727_v26 = vpack.c.bf16 %v1719_v9, %v1715_v62  ;;  %v1714_v42 = vmul.f32 %v1698_v27, %v1586_v15 }
 0x8dd   :  { %v2798_v28 = vpop.eup %2797  ;;  %v1728_v30 = vpack.c.bf16 %v1720_v4, %v1716_v24  ;;  %v1717_v48 = vmul.f32 %v1701_v33, %v1589_v7 }
 0x8de   :  { %v2800_v34 = vpop.eup %2799  ;;  %2022 = vmatmul.bf16.gmra.mxu0 %v1727_v26  ;;  %v1702_v35 = vadd.f32 1.0, %v2798_v28 }
 0x8df   :  { %2041 = vmatmul.bf16.gmra.mxu1 %v1728_v30  ;;  %v1705_v37 = vadd.f32 1.0, %v2800_v34 }
 0x8e0   :  { %v1718_v22 = vmul.f32 %v1702_v35, %v1590_v2 }
 0x8e1   :  { %v1721_v51 = vmul.f32 %v1705_v37, %v1593_v6 }
 0x8e2   :  { %v1726_v43 = vpack.c.bf16 %v1718_v22, %v1714_v42 }
 0x8e3   :  { %v1729_v23 = vpack.c.bf16 %v1721_v51, %v1717_v48 }
 0x8e4   :  { %2003 = vmatmul.bf16.gmra.mxu3 %v1726_v43 }
 0x8e5   :  { %2060 = vmatmul.bf16.gmra.mxu2 %v1729_v23 }
 0x929   :  { %v2018_v18 = vpop.f32.mrf.mxu0 }
 0x92a   :  { %v2037_v60 = vpop.f32.mrf.mxu1 }
 0x931   :  { %v2020_v36 = vpop.f32.mrf.mxu0 }
 0x932   :  { %v2039_v46 = vpop.f32.mrf.mxu1 }
 0x935   :  { %v1999_v45 = vpop.f32.mrf.mxu3 }
 0x936   :  { %v2000_v49 = vadd.f32 %v2717_v53, %v1999_v45  ;;  %v2056_v21 = vpop.f32.mrf.mxu2 }
 0x938   :  { %v2019_v61 = vadd.f32 %v2018_v18, %v2000_v49 }
 0x93a   :  { %v2038_v55 = vadd.f32 %v2037_v60, %v2019_v61 }
 0x93c   :  { %v2057_v13 = vadd.f32 %v2056_v21, %v2038_v55 }
 0x93d   :  { %v2001_v32 = vpop.f32.mrf.mxu3 }
 0x93e   :  { %v2070_v52 = vmul.f32 %v2718_v10, %v2057_v13  ;;  %v2002_v63 = vadd.f32 %v2717_v53, %v2001_v32  ;;  %v2058_v38 = vpop.f32.mrf.mxu2 }
 0x940   :  { %v2074_v25 = vadd.f32 %v2070_v52, %v3358_v50  ;;  %v2021_v29 = vadd.f32 %v2020_v36, %v2002_v63 }
 0x942   :  { %2078 = vst [vmem:[#allocation2] sm:$0xf] %v2074_v25  ;;  %v2040_v3 = vadd.f32 %v2039_v46, %v2021_v29 }
 0x944   :  { %v2059_v59 = vadd.f32 %v2058_v38, %v2040_v3 }
 0x946   :  { %v2071_v31 = vmul.f32 %v2718_v10, %v2059_v59 }
 0x948   :  { %v2075_v40 = vadd.f32 %v2071_v31, %v3362_v57 }
 0x94a   :  { %2079 = vst [vmem:[#allocation2 + $0x4] sm:$0xf] %v2075_v40 }
 0x95b   :  { %v2023_v5 = vpop.f32.mrf.mxu0 }
 0x95c   :  { %v2042_v58 = vpop.f32.mrf.mxu1 }
 0x963   :  { %v2025_v16 = vpop.f32.mrf.mxu0 }
 0x964   :  { %v2044_v19 = vpop.f32.mrf.mxu1 }
 0x967   :  { %v2004_v0 = vpop.f32.mrf.mxu3 }
 0x968   :  { %v2005_v44 = vadd.f32 %v2717_v53, %v2004_v0  ;;  %v2061_v11 = vpop.f32.mrf.mxu2 }
 0x96a   :  { %v2024_v39 = vadd.f32 %v2023_v5, %v2005_v44 }
 0x96c   :  { %v2043_v14 = vadd.f32 %v2042_v58, %v2024_v39 }
 0x96e   :  { %v2062_v41 = vadd.f32 %v2061_v11, %v2043_v14 }
 0x96f   :  { %v2006_v47 = vpop.f32.mrf.mxu3 }
 0x970   :  { %v2072_v50 = vmul.f32 %v2718_v10, %v2062_v41  ;;  %v2007_v12 = vadd.f32 %v2717_v53, %v2006_v47  ;;  %v2063_v57 = vpop.f32.mrf.mxu2 }
 0x972   :  { %v2076_v17 = vadd.f32 %v2072_v50, %v3366_v54  ;;  %v2026_v56 = vadd.f32 %v2025_v16, %v2007_v12 }
 0x974   :  { %2080 = vst [vmem:[#allocation2 + $0x8] sm:$0xf] %v2076_v17  ;;  %v2045_v20 = vadd.f32 %v2044_v19, %v2026_v56 }
 0x976   :  { %v2064_v8 = vadd.f32 %v2063_v57, %v2045_v20 }
 0x978   :  { %v2073_v62 = vmul.f32 %v2718_v10, %v2064_v8 }
 0x97a   :  { %v2077_v9 = vadd.f32 %v2073_v62, %v3370_v1 }
 0x97c   :  { %2081 = vst [vmem:[#allocation2 + $0xc] sm:$0xf] %v2077_v9 }
 0x97d   :  { %2094 = dma.vmem_to_hbm [thread:$0]  %s2087_s17, 256, %s2089_s4, [#allocation3], %s2828_s3, %s2828_s3, %s2830_s13  }
 0x97e   :  { %2825 = dma.done.wait [#allocation3], 256  }
 0x97f   :  { %2826 = vsyncadd [#allocation3], 4294967040 }
 0x980   :  { %2099 = vsyncpa [#allocation3], 1 }

</bundles_post_ra>
